<compile_context>
chip_gen: v7x
topology: tpu7x:2x2x1
jax: 0.10.0
libtpu: 0.0.40
codegen_flags: <defaults>
</compile_context>

<pallas_src>
import jax
import jax.numpy as jnp
from jax.experimental import pallas as pl
from jax.experimental.pallas import tpu as pltpu


def _make_kernel(C):
    def kernel(x_ref, wqkv_ref, wproj_ref, bias_ref, o_ref):
        # x_ref: (1, C, N) f32 tokens, channel-major, one batch element.
        x = x_ref[0]                                        # (C, N) f32
        x_bf = x.astype(jnp.bfloat16)

        # Fused QKV projection: qkv^T = Wqkv @ x^T.  Softmax scale is already
        # folded into the Q rows of Wqkv in the wrapper.
        qkv = jnp.dot(wqkv_ref[...], x_bf,
                      preferred_element_type=jnp.float32)   # (3C, N)
        q = qkv[0 * C:1 * C].astype(jnp.bfloat16)           # (C, N)
        k = qkv[1 * C:2 * C].astype(jnp.bfloat16)           # (C, N)
        v = qkv[2 * C:3 * C].astype(jnp.bfloat16)           # (C, N)

        # Attention scores over tokens: s[i, j] = sum_c q[c, i] * k[c, j]
        # (lhs-transposed contraction; no explicit relayout of q/k needed).
        s = jax.lax.dot_general(q, k, (((0,), (0,)), ((), ())),
                                preferred_element_type=jnp.float32)   # (N, N)

        # Numerically stable softmax along the last (lane-dense) dim.
        s = s - jnp.max(s, axis=-1, keepdims=True)
        p = jnp.exp(s)
        p = p * pl.reciprocal(jnp.sum(p, axis=-1, keepdims=True), approx=True)

        # Attend: out[c, i] = sum_j v[c, j] * p[i, j]  (rhs-transposed matmul).
        out = jax.lax.dot_general(v, p.astype(jnp.bfloat16),
                                  (((1,), (1,)), ((), ())),
                                  preferred_element_type=jnp.float32)  # (C, N)

        # Output projection (Linear with bias), still channel-major.
        out = jnp.dot(wproj_ref[...], out.astype(jnp.bfloat16),
                      preferred_element_type=jnp.float32)              # (C, N)
        out = out + bias_ref[...]                                      # (C,1) bcast

        # ChannelAttention: sigmoid(cross_attention(x, x)) * x
        o_ref[0] = jax.nn.sigmoid(out) * x

    return kernel


def channel_attention(x, w_qkv, w_proj, b_proj, num_heads=4):
    """x: (B, C, H, W) f32, w_qkv: (3C, C), w_proj: (C, C), b_proj: (C,)."""
    B, C, H, W = x.shape
    N = H * W
    scale = float((C // num_heads) ** (-0.5))

    # NCHW -> (B, C, N): metadata-only reshape, NO transpose.
    xs = x.reshape(B, C, N).astype(jnp.float32)

    # Channel-major layout uses the PyTorch Linear weights directly
    # (y^T = W @ x^T).  Fold the softmax scale into the Q rows of the fused
    # QKV weight and cast weights to bf16 for the MXU.
    wqkv = jnp.concatenate([w_qkv[:C] * scale, w_qkv[C:]], axis=0)
    wqkv = wqkv.astype(jnp.bfloat16)                       # (3C, C)
    wp = w_proj.astype(jnp.bfloat16)                       # (C, C)
    bp = b_proj.reshape(C, 1).astype(jnp.float32)          # (C, 1)

    out = pl.pallas_call(
        _make_kernel(C),
        out_shape=jax.ShapeDtypeStruct((B, C, N), jnp.float32),
        grid_spec=pltpu.PrefetchScalarGridSpec(
            num_scalar_prefetch=0,
            grid=(B,),
            in_specs=[
                pl.BlockSpec((1, C, N), lambda b: (b, 0, 0)),    # tokens
                pl.BlockSpec((3 * C, C), lambda b: (0, 0)),      # fused Wqkv
                pl.BlockSpec((C, C), lambda b: (0, 0)),          # Wproj
                pl.BlockSpec((C, 1), lambda b: (0, 0)),          # proj bias
            ],
            out_specs=pl.BlockSpec((1, C, N), lambda b: (b, 0, 0)),
        ),
        compiler_params=pltpu.CompilerParams(
            dimension_semantics=("parallel",),
            vmem_limit_bytes=32 * 1024 * 1024,   # <= 50% of v7x physical VMEM
        ),
    )(xs, wqkv, wp, bp)

    # (B, C, N) -> NCHW: free reshape, no transpose.
    return out.reshape(B, C, H, W).astype(x.dtype)


def channel_attention_ref(x, w_qkv, w_proj, b_proj, num_heads=4):
    """Pure-JAX (f32) reference mirroring the PyTorch forward."""
    B, C, H, W = x.shape
    N = H * W
    scale = (C // num_heads) ** (-0.5)
    xs = jnp.transpose(x.reshape(B, C, N), (0, 2, 1))      # (B, N, C)
    qkv = xs @ w_qkv.T                                     # (B, N, 3C)
    q, k, v = jnp.split(qkv, 3, axis=-1)
    attn = jax.nn.softmax((q @ jnp.swapaxes(k, -1, -2)) * scale, axis=-1)
    out = attn @ v
    out = out @ w_proj.T + b_proj
    ca = jnp.transpose(out, (0, 2, 1)).reshape(B, C, H, W)
    return jax.nn.sigmoid(ca) * x


if __name__ == "__main__":
    B, C, H, W = 2, 32, 16, 16  # in_channels = 32, num_heads = 4, N = 256
    key = jax.random.PRNGKey(0)
    kx, kqkv, kpw, kpb = jax.random.split(key, 4)

    # Deterministic synthetic parameters (nn.Linear-style scaling).
    bound = 1.0 / (C ** 0.5)
    x = jax.random.normal(kx, (B, C, H, W), dtype=jnp.float32)
    w_qkv = jax.random.uniform(kqkv, (3 * C, C), jnp.float32, -bound, bound)
    w_proj = jax.random.uniform(kpw, (C, C), jnp.float32, -bound, bound)
    b_proj = jax.random.uniform(kpb, (C,), jnp.float32, -bound, bound)

    y = channel_attention(x, w_qkv, w_proj, b_proj)
    y = jax.block_until_ready(y)

    y_ref = channel_attention_ref(x, w_qkv, w_proj, b_proj)
    assert y.shape == (B, C, H, W)
    # bf16 MXU operands + approx reciprocal -> loosened tolerance vs f32 ref.
    assert jnp.allclose(y, y_ref, atol=2e-2, rtol=2e-2), "mismatch vs reference"

    print("KERNEL_OK")
</pallas_src>

<mosaic_0001>
module attributes {stable_mosaic.version = 11 : i64} {
  func.func @kernel(%arg0: i32, %arg1: memref<1x32x256xf32, #tpu.memory_space<vmem>>, %arg2: memref<96x32xbf16, #tpu.memory_space<vmem>>, %arg3: memref<32x32xbf16, #tpu.memory_space<vmem>>, %arg4: memref<32x1xf32, #tpu.memory_space<vmem>>, %arg5: memref<1x32x256xf32, #tpu.memory_space<vmem>>) attributes {dimension_semantics = [#tpu.dimension_semantics<parallel>], iteration_bounds = array<i64: 2>, scalar_prefetch = 0 : i64, scratch_operands = 0 : i64, tpu.core_type = #tpu.core_type<tc>, window_params = [{transform_indices = @transform_0, window_bounds = array<i64: 1, 32, 256>}, {pipeline_mode = #tpu.pipeline_mode<synchronous>, transform_indices = @transform_1, window_bounds = array<i64: 96, 32>}, {pipeline_mode = #tpu.pipeline_mode<synchronous>, transform_indices = @transform_2, window_bounds = array<i64: 32, 32>}, {pipeline_mode = #tpu.pipeline_mode<synchronous>, transform_indices = @transform_3, window_bounds = array<i64: 32, 1>}, {transform_indices = @transform_4, window_bounds = array<i64: 1, 32, 256>}]} {
    %c0 = arith.constant 0 : index
    %c0_0 = arith.constant 0 : index
    %c0_1 = arith.constant 0 : index
    %0 = vector.load %arg1[%c0, %c0_0, %c0_1] : memref<1x32x256xf32, #tpu.memory_space<vmem>>, vector<1x32x256xf32>
    %1 = vector.shape_cast %0 : vector<1x32x256xf32> to vector<32x256xf32>
    %2 = arith.truncf %1 : vector<32x256xf32> to vector<32x256xbf16>
    %c0_2 = arith.constant 0 : index
    %c0_3 = arith.constant 0 : index
    %3 = vector.load %arg2[%c0_2, %c0_3] : memref<96x32xbf16, #tpu.memory_space<vmem>>, vector<96x32xbf16>
    %cst = arith.constant dense<0.000000e+00> : vector<96x256xf32>
    %4 = tpu.matmul %3, %2, %cst {dimension_numbers = #tpu.dot_dimension_numbers<[1], [0], [0], [1], [0, 0, 1, 1], [], []>} : vector<96x32xbf16>, vector<32x256xbf16>, vector<96x256xf32> -> vector<96x256xf32>
    %5 = vector.extract_strided_slice %4 {offsets = [0, 0], sizes = [32, 256], strides = [1, 1]} : vector<96x256xf32> to vector<32x256xf32>
    %6 = arith.truncf %5 : vector<32x256xf32> to vector<32x256xbf16>
    %7 = vector.extract_strided_slice %4 {offsets = [32, 0], sizes = [32, 256], strides = [1, 1]} : vector<96x256xf32> to vector<32x256xf32>
    %8 = arith.truncf %7 : vector<32x256xf32> to vector<32x256xbf16>
    %9 = vector.extract_strided_slice %4 {offsets = [64, 0], sizes = [32, 256], strides = [1, 1]} : vector<96x256xf32> to vector<32x256xf32>
    %10 = arith.truncf %9 : vector<32x256xf32> to vector<32x256xbf16>
    %cst_4 = arith.constant dense<0.000000e+00> : vector<256x256xf32>
    %11 = tpu.matmul %6, %8, %cst_4 {dimension_numbers = #tpu.dot_dimension_numbers<[0], [0], [1], [1], [0, 1, 1, 1], [], []>} : vector<32x256xbf16>, vector<32x256xbf16>, vector<256x256xf32> -> vector<256x256xf32>
    %cst_5 = arith.constant dense<0xFF800000> : vector<256xf32>
    %12 = vector.multi_reduction <maximumf>, %11, %cst_5 [1] : vector<256x256xf32> to vector<256xf32>
    %13 = vector.shape_cast %12 : vector<256xf32> to vector<256x1xf32>
    %14 = vector.broadcast %13 : vector<256x1xf32> to vector<256x256xf32>
    %15 = arith.subf %11, %14 : vector<256x256xf32>
    %16 = math.exp %15 : vector<256x256xf32>
    %cst_6 = arith.constant dense<0.000000e+00> : vector<256xf32>
    %17 = vector.multi_reduction <add>, %16, %cst_6 [1] : vector<256x256xf32> to vector<256xf32>
    %18 = vector.shape_cast %17 : vector<256xf32> to vector<256x1xf32>
    %19 = tpu.reciprocal %18 {approx = true} : vector<256x1xf32> -> vector<256x1xf32>
    %20 = vector.broadcast %19 : vector<256x1xf32> to vector<256x256xf32>
    %21 = arith.mulf %16, %20 : vector<256x256xf32>
    %22 = arith.truncf %21 : vector<256x256xf32> to vector<256x256xbf16>
    %cst_7 = arith.constant dense<0.000000e+00> : vector<32x256xf32>
    %23 = tpu.matmul %10, %22, %cst_7 {dimension_numbers = #tpu.dot_dimension_numbers<[1], [1], [0], [0], [0, 0, 1, 0], [], []>} : vector<32x256xbf16>, vector<256x256xbf16>, vector<32x256xf32> -> vector<32x256xf32>
    %c0_8 = arith.constant 0 : index
    %c0_9 = arith.constant 0 : index
    %24 = vector.load %arg3[%c0_8, %c0_9] : memref<32x32xbf16, #tpu.memory_space<vmem>>, vector<32x32xbf16>
    %25 = arith.truncf %23 : vector<32x256xf32> to vector<32x256xbf16>
    %cst_10 = arith.constant dense<0.000000e+00> : vector<32x256xf32>
    %26 = tpu.matmul %24, %25, %cst_10 {dimension_numbers = #tpu.dot_dimension_numbers<[1], [0], [0], [1], [0, 0, 1, 1], [], []>} : vector<32x32xbf16>, vector<32x256xbf16>, vector<32x256xf32> -> vector<32x256xf32>
    %c0_11 = arith.constant 0 : index
    %c0_12 = arith.constant 0 : index
    %27 = vector.load %arg4[%c0_11, %c0_12] : memref<32x1xf32, #tpu.memory_space<vmem>>, vector<32x1xf32>
    %28 = vector.broadcast %27 : vector<32x1xf32> to vector<32x256xf32>
    %29 = arith.addf %26, %28 : vector<32x256xf32>
    %30 = arith.negf %29 : vector<32x256xf32>
    %31 = math.exp %30 : vector<32x256xf32>
    %cst_13 = arith.constant 1.000000e+00 : f32
    %32 = vector.broadcast %cst_13 : f32 to vector<32x256xf32>
    %33 = arith.addf %32, %31 : vector<32x256xf32>
    %34 = arith.divf %32, %33 : vector<32x256xf32>
    %35 = arith.mulf %34, %1 : vector<32x256xf32>
    %c0_14 = arith.constant 0 : index
    %c0_15 = arith.constant 0 : index
    %c0_16 = arith.constant 0 : index
    %36 = vector.load %arg5[%c0_14, %c0_15, %c0_16] : memref<1x32x256xf32, #tpu.memory_space<vmem>>, vector<1x32x256xf32>
    %37 = vector.shape_cast %36 : vector<1x32x256xf32> to vector<32x256xf32>
    %38 = vector.shape_cast %35 : vector<32x256xf32> to vector<1x32x256xf32>
    tpu.vector_store %arg5[%c0_14, %c0_15, %c0_16], %38 {strides = array<i32>} : memref<1x32x256xf32, #tpu.memory_space<vmem>>, vector<1x32x256xf32>,
    return
  }
  func.func @transform_0(%arg0: i32) -> (i32, i32, i32) {
    %c0_i32 = arith.constant 0 : i32
    %c0_i32_0 = arith.constant 0 : i32
    %c0_i32_1 = arith.constant 0 : i32
    return %arg0, %c0_i32, %c0_i32_0 : i32, i32, i32
  }
  func.func @transform_1(%arg0: i32) -> (i32, i32) {
    %c0_i32 = arith.constant 0 : i32
    %c0_i32_0 = arith.constant 0 : i32
    %c0_i32_1 = arith.constant 0 : i32
    return %c0_i32, %c0_i32_0 : i32, i32
  }
  func.func @transform_2(%arg0: i32) -> (i32, i32) {
    %c0_i32 = arith.constant 0 : i32
    %c0_i32_0 = arith.constant 0 : i32
    %c0_i32_1 = arith.constant 0 : i32
    return %c0_i32, %c0_i32_0 : i32, i32
  }
  func.func @transform_3(%arg0: i32) -> (i32, i32) {
    %c0_i32 = arith.constant 0 : i32
    %c0_i32_0 = arith.constant 0 : i32
    %c0_i32_1 = arith.constant 0 : i32
    return %c0_i32, %c0_i32_0 : i32, i32
  }
  func.func @transform_4(%arg0: i32) -> (i32, i32, i32) {
    %c0_i32 = arith.constant 0 : i32
    %c0_i32_0 = arith.constant 0 : i32
    %c0_i32_1 = arith.constant 0 : i32
    return %arg0, %c0_i32, %c0_i32_0 : i32, i32, i32
  }
}

</mosaic_0001>

<bundles_post_ra>
// kernel: tpu_custom_call.1
= control target key start
LH: loop header
LB: loop body
LE: loop exit
PB: predicated region body
PF: predicated region fallthrough
CT: control target
= control target key end

     0   :  { %9 = vsyncpa [#allocation3], 0  ;;  %s2797_s0 = inlined_call_operand.hbm [shape: f32[2,32,256], index: 0, kind: input, shape index: {}]   ;;  %s2798_s1 = inlined_call_operand.vmem [shape: bf16[96,32], index: 1, kind: input, shape index: {}]   ;;  %s2799_s2 = inlined_call_operand.vmem [shape: bf16[32,32], index: 2, kind: input, shape index: {}]   ;;  %s2800_s3 = inlined_call_operand.vmem [shape: f32[32,1], index: 3, kind: input, shape index: {}]   ;;  %s2801_s4 = inlined_call_operand.hbm [shape: f32[2,32,256], index: 4, kind: output, shape index: {}]  }
   0x1   :  { %11 = vsyncpa [#allocation3 + $0x1], 0 }
   0x2   :  { %12 = vsyncpa [#allocation4], 0 }
   0x3   :  { %14 = vsyncpa [#allocation4 + $0x1], 0  ;;  %s1964_s15 = smov 0   ;;  %s1966_s16 = smov 0  }
   0x4   :  { %s1968_s17 = smov 0   ;;  %s1970_s18 = smov 0  }
   0x5 LB: > { %s1985_s19 = sadd.s32 4294967295, %s1930_s18   ;;  %s1485_s20 = sadd.s32 4294967294, %s1930_s18   ;;  %s1930_s18 = sphi %s1970_s18, %s2907_s18   ;;  %s1926_s17 = sphi %s1968_s17, %s2906_s17   ;;  %s1922_s16 = sphi %s1966_s16, %s2905_s16   ;;  %s1918_s15 = sphi %s1964_s15, %s2904_s15  }
   0x6   : > { %s1989_s21 = sadd.s32 1, %s1930_s18   ;;  %s27_s22 = sadd.s32 1, %s1926_s17 }
   0x7   : > { %s24_s23 = ssub.s32 %s1930_s18, %s1989_s21  ;;  %p34_p0 = scmp.ne.s32.totalorder %s1926_s17, %s1922_s16 }
   0x8   : > { %p25_p1 = scmp.eq.s32.totalorder %s24_s23, 0  ;;  %p35_p2 = scmp.eq.s32.totalorder %s1930_s18, 0 }
   0x9   : > { %p40_p3 = scmp.ne.s32.totalorder %s1922_s16, %s1918_s15  ;;  %p41_p4 = scmp.eq.s32.totalorder %s1985_s19, 0 }
   0xa   : > { %s2001_s24 = scalar_select %p25_p1, %s1926_s17, %s27_s22  }
   0xb   : > { %p2003_p5 = por %p35_p2, %p34_p0  ;;  %p2007_p6 = por %p41_p4, %p40_p3 }
   0xc   : > { %p127_p7 = scmp.eq.s32.totalorder %s1985_s19, 1  ;;  %p133_p8 = scmp.eq.s32.totalorder %s1485_s20, 1 }
   0xd   : > { %p1553_p10 = scmp.lt.s32.totalorder %s1930_s18, 2  ;;  %s162_s29 = sand.u32 1, %s1926_s17  }
   0xe   : > { %p2014_p11 = por %p127_p7, %p34_p0  ;;  %p2018_p12 = por %p133_p8, %p40_p3 }
   0xf   : > { %s1539_s30 = sshll.u32 %s1930_s18, 10  ;;  %s1488_s5 = sshll.u32 %s162_s29, 6 }
  0x10   : > { %s2834_s27 = scalar_select %p2014_p11, 1, 0 }
  0x11   : > { %s2835_s28 = scalar_select %p2018_p12, 1, 0 }
  0x12   : > { %s2027_s8 = scalar_lea.hbm %s2797_s0, %s1539_s30  ;;  %s166_s9 = scalar_lea.vmem [#allocation2], %s1488_s5 }
  0x13   : > { %s173_s10 = sshll.u32 %s166_s9, 4  ;;  %p2031_p13 = pnand %p1553_p10, %p2003_p5  ;;  %s2035_s10 = int_to_ptr.vmem [resolvable:$true] %s173_s10 }
  0x14   : > { %s2037_s12 = scalar_lea.sflag [#allocation3], %s162_s29  ;;  %s1834_s13 = scalar_lea.hbm %s2027_s8, 1024 }
  0x15   : > { %p1835_p0 = scmp.ne.s32.totalorder %s2027_s8, %s1834_s13  ;;  %p1836_p1 = pneg %p2031_p13 }
  0x16   : > { %s1839_s22 = scalar_lea.hbm %s2797_s0, 2048  ;;  %p1840_p4 = scmp.lt.u32.totalorder %s2027_s8, %s2797_s0 }
  0x17   : > { %p1837_p2 = pnand %p1836_p1, %p1835_p0  ;;  %p1841_p5 = scmp.lt.u32.totalorder %s1839_s22, %s1834_s13 }
  0x18   : > { %p1843_p8 = scmp.lt.u32.totalorder %s1834_s13, %s2027_s8 }
  0x19   : > { %p1838_p3 = pneg %p1837_p2  ;;  %p1842_p7 = por %p1841_p5, %p1840_p4 }
  0x1b   : > { %p1844_p10 = por %p1843_p8, %p1842_p7 }
  0x1d   : > { %p1845_p9 = pnand %p1844_p10, %p1838_p3 }
  0x1f   : > { %1848 = shalt.err (!%p1845_p9)
}
  0x20   : > { %s1849_s29 = scalar_lea.vmem %s2035_s10, 1024  ;;  %s1932_s30 = smov [#allocation2]  }
  0x21   : > { %p1850_p0 = scmp.ne.s32.totalorder %s2035_s10, %s1849_s29  ;;  %s1854_s5 = sshll.u32 %s1932_s30, 4  ;;  %s1855_s5 = int_to_ptr.vmem [resolvable:$false] %s1854_s5 }
  0x22   : > { %s1856_s6 = scalar_lea.vmem %s1855_s5, 2048  ;;  %p1857_p11 = scmp.lt.s32.totalorder %s2035_s10, %s1855_s5 }
  0x23   : > { %p1852_p2 = pnand %p1850_p0, %p1836_p1  ;;  %p1858_p4 = scmp.lt.s32.totalorder %s1856_s6, %s1849_s29 }
  0x25   : > { %p1853_p12 = pneg %p1852_p2  ;;  %p1859_p5 = por %p1858_p4, %p1857_p11 }
  0x27   : > { %p1860_p7 = pnand %p1859_p5, %p1853_p12 }
  0x29   : > { %1863 = shalt.err (!%p1860_p7)
}
  0x2a   : > { %s1933_s7 = smov 256   ;;  %s1934_s9 = smov 16  }
  0x2b   : > { %1548 = dma.hbm_to_vmem [thread:$0]  (!%p2031_p13), %s2027_s8, 1024, %s2035_s10, %s2037_s12, %s1933_s7, %s1933_s7, %s1934_s9  }
  0x2c   : > { %p1491_p9 = scmp.ge.s32.totalorder %s1930_s18, 1  ;;  %p181_p1 = scmp.lt.s32.totalorder %s1930_s18, 3 }
  0x2e   : > { %p182_p3 = pnand %p1491_p9, %p181_p1 }
  0x30   : > { %185 = sbr.rel (%p182_p3) target bundleno = 1621 (0x655), region = 36 }
  0x37   : > { %s2068_s13 = sand.u32 1, %s1922_s16  }
  0x38   : > { %s1492_s14 = sshll.u32 %s2068_s13, 6  ;;  %s188_s20 = scalar_lea.sflag [#allocation3], %s2068_s13 }
  0x39   : > { %s2074_s22 = scalar_lea.vmem [#allocation2], %s1492_s14 }
  0x3a   : > { %1909 = dma.done.wait (%p2007_p6), %s188_s20, 1024  }
  0x3b   : > { %1911 = vsyncadd (%p2007_p6), %s188_s20, 4294966272  ;;  %v2803_v0 = vmov 0   ;;  %v218_v1 = vld [vmem:[%s2074_s22 + $0x8] sm:$0xff]  ;;  %v220_v2 = vld [vmem:[%s2074_s22 + $0x18] sm:$0xff]  ;;  %vm271_vm0 = vcmask 261120   ;;  %s215_s6 = scalar_lea.vmem [#allocation5], %s1492_s14 }
  0x3c   : > { %322 = vmatprep.mubr.bf16.mxu0 %v2803_v0  ;;  %507 = vmatprep.mubr.bf16.mxu1 %v2803_v0  ;;  %v217_v3 = vld [vmem:[%s2074_s22] sm:$0xff]  ;;  %v226_v4 = vpack.c.bf16 %v220_v2, %v218_v1  ;;  %v219_v5 = vld [vmem:[%s2074_s22 + $0x10] sm:$0xff]  ;;  %v222_v6 = vld [vmem:[%s2074_s22 + $0x28] sm:$0xff]  ;;  %s1540_s7 = sshll.u32 %s1985_s19, 10  ;;  %s1412_s9 = sshll.u32 %s215_s6, 4  ;;  %s2752_s9 = int_to_ptr.vmem [resolvable:$true] %s1412_s9 }
  0x3d   : > { %v224_v7 = vld [vmem:[%s2074_s22 + $0x38] sm:$0xff]  ;;  %v225_v8 = vpack.c.bf16 %v219_v5, %v217_v3  ;;  %v221_v10 = vld [vmem:[%s2074_s22 + $0x20] sm:$0xff]  ;;  %v223_v11 = vld [vmem:[%s2074_s22 + $0x30] sm:$0xff]  ;;  %s2750_s26 = scalar_lea.hbm %s2801_s4, %s1540_s7  ;;  %s1399_s19 = scalar_lea.sflag [#allocation4], %s2068_s13 }
  0x3e   : > { %v228_v9 = vpack.c.bf16 %v224_v7, %v222_v6  ;;  %290 = vmatprep.subr.bf16.mxu0 %v226_v4  ;;  %v227_v12 = vpack.c.bf16 %v223_v11, %v221_v10  ;;  %v1594_v13 = vld [vmem:[%s2798_s1] sm:$0xff]   ;;  %v1595_v14 = vld [vmem:[%s2798_s1 + $0x8] sm:$0xff]   ;;  %v1596_v15 = vld [vmem:[%s2798_s1 + $0x10] sm:$0xff]   ;;  %s1864_s8 = scalar_lea.vmem %s2752_s9, 1024  ;;  %p2901_p11 = scmp.ne.s32.totalorder %s2834_s27, 0 }
  0x3f   : > { %291 = vmatpush1.bf16.msra.mxu0 %v225_v8  ;;  %v1597_v16 = vld [vmem:[%s2798_s1 + $0x18] sm:$0xff]   ;;  %p1865_p6 = scmp.ne.s32.totalorder %s2752_s9, %s1864_s8  ;;  %s1936_s10 = smov [#allocation5]  }
  0x40   : > { %292 = vmatprep.subr.bf16.mxu0 %v228_v9  ;;  %s1868_s11 = sshll.u32 %s1936_s10, 4  ;;  %s1869_s11 = int_to_ptr.vmem [resolvable:$false] %s1868_s11 }
  0x41   : > { %p1866_p12 = pnand %p1865_p6, %p2901_p11  ;;  %s1870_s12 = scalar_lea.vmem %s1869_s11, 2048 }
  0x42   : > { %p1871_p8 = scmp.lt.s32.totalorder %s2752_s9, %s1869_s11  ;;  %p1872_p10 = scmp.lt.s32.totalorder %s1870_s12, %s1864_s8 }
  0x43   : > { %293 = vmatpush1.bf16.msra.mxu0 %v227_v12  ;;  %p1867_p13 = pneg %p1866_p12 }
  0x44   : > { %p1873_p0 = por %p1872_p10, %p1871_p8 }
  0x46   : > { %1500 = vmatmul.mubr.msk.bf16.vlgmr.msra.gmra.mrb[0].mxu0 %vm271_vm0, %v1594_v13  ;;  %p1874_p2 = pnand %p1873_p0, %p1867_p13 }
  0x47   : > { %332 = vmatprep.mubr.bf16.mxu0 %v2803_v0 }
  0x4e   : > { %1501 = vmatmul.mubr.msk.bf16.gmra.mrb[4].mxu0 %vm271_vm0, %v1595_v14 }
  0x4f   : > { %342 = vmatprep.mubr.bf16.mxu0 %v2803_v0 }
  0x56   : > { %1502 = vmatmul.mubr.msk.bf16.gmra.mrb[8].mxu0 %vm271_vm0, %v1596_v15 }
  0x57   : > { %352 = vmatprep.mubr.bf16.mxu0 %v2803_v0 }
  0x5e   : > { %1503 = vmatmul.mubr.msk.bf16.gmra.mrb[12].mxu0 %vm271_vm0, %v1597_v16 }
  0x5f   : > { %362 = vmatprep.mubr.bf16.mxu0 %v2803_v0 }
 0x119   : > { %v324_v17 = vpop.f32.mrb[0].mxu0 }
 0x11a   : > { %v326_v18 = vpop.f32.mrb[1].mxu0 }
 0x11b   : > { %v328_v19 = vpop.f32.mrb[2].mxu0 }
 0x11c   : > { %v330_v20 = vpop.f32.mrb[3].mxu0  ;;  %v383_v21 = vpack.c.bf16 %v328_v19, %v324_v17 }
 0x11d   : > { %v384_v22 = vpack.c.bf16 %v330_v20, %v326_v18 }
 0x11e   : > { %395 = vxpose.xlu0.c.b16.start [1/2] (short) %v383_v21, 128 }
 0x11f   : > { %411 = vxpose.xlu1.c.b16.start [1/2] (short) %v384_v22, 128 }
 0x121   : > { %v334_v23 = vpop.f32.mrb[4].mxu0 }
 0x122   : > { %v336_v24 = vpop.f32.mrb[5].mxu0 }
 0x123   : > { %v338_v25 = vpop.f32.mrb[6].mxu0 }
 0x124   : > { %v385_v26 = vpack.c.bf16 %v338_v25, %v334_v23  ;;  %v340_v27 = vpop.f32.mrb[7].mxu0 }
 0x125   : > { %v386_v28 = vpack.c.bf16 %v340_v27, %v336_v24 }
 0x126   : > { %396 = vxpose.xlu0.c.b16.end [2/2] (short) %v385_v26, 128 }
 0x127   : > { %412 = vxpose.xlu1.c.b16.end [2/2] (short) %v386_v28, 128 }
 0x129   : > { %v344_v29 = vpop.f32.mrb[8].mxu0 }
 0x12a   : > { %v346_v30 = vpop.f32.mrb[9].mxu0 }
 0x12b   : > { %v348_v31 = vpop.f32.mrb[10].mxu0  ;;  %1593 = vset.pattern.permute.xlu1 %v2803_v0 }
 0x12c   : > { %v387_v32 = vpack.c.bf16 %v348_v31, %v344_v29  ;;  %v350_v33 = vpop.f32.mrb[11].mxu0 }
 0x12d   : > { %v388_v34 = vpack.c.bf16 %v350_v33, %v346_v30 }
 0x12f   : > { %475 = vmatprep.subr.bf16.mxu1 %v388_v34  ;;  %1592 = vset.pattern.permute.xlu0 %v2803_v0 }
 0x130   : > { %476 = vmatpush1.bf16.msra.mxu1 %v387_v32 }
 0x131   : > { %v354_v35 = vpop.f32.mrb[12].mxu0 }
 0x132   : > { %v356_v36 = vpop.f32.mrb[13].mxu0 }
 0x133   : > { %v358_v37 = vpop.f32.mrb[14].mxu0 }
 0x134   : > { %v389_v38 = vpack.c.bf16 %v358_v37, %v354_v35  ;;  %v360_v39 = vpop.f32.mrb[15].mxu0 }
 0x135   : > { %v390_v40 = vpack.c.bf16 %v360_v39, %v356_v36 }
 0x137   : > { %477 = vmatprep.subr.bf16.mxu1 %v390_v40 }
 0x138   : > { %478 = vmatpush1.bf16.msra.mxu1 %v389_v38 }
 0x188   : > { %v403_v41 = vpop.trf.xlu0 }
 0x189   : > { %1506 = vmatmul.mubr.msk.bf16.vlgmr.msra.gmra.mrb[0].mxu1 %vm271_vm0, %v403_v41  ;;  %v419_v49 = vpop.trf.xlu1 }
 0x18a   : > { %517 = vmatprep.mubr.bf16.mxu1 %v2803_v0 }
 0x18c   : > { %v404_v42 = vpop.trf.xlu0 }
 0x18d   : > { %v420_v50 = vpop.trf.xlu1 }
 0x190   : > { %v405_v43 = vpop.trf.xlu0 }
 0x191   : > { %1507 = vmatmul.mubr.msk.bf16.gmra.mrb[4].mxu1 %vm271_vm0, %v404_v42  ;;  %v421_v51 = vpop.trf.xlu1 }
 0x192   : > { %527 = vmatprep.mubr.bf16.mxu1 %v2803_v0 }
 0x194   : > { %v406_v44 = vpop.trf.xlu0 }
 0x195   : > { %v422_v52 = vpop.trf.xlu1 }
 0x198   : > { %v407_v45 = vpop.trf.xlu0 }
 0x199   : > { %1508 = vmatmul.mubr.msk.bf16.gmra.mrb[8].mxu1 %vm271_vm0, %v405_v43  ;;  %v423_v53 = vpop.trf.xlu1 }
 0x19a   : > { %537 = vmatprep.mubr.bf16.mxu1 %v2803_v0 }
 0x19c   : > { %v408_v46 = vpop.trf.xlu0 }
 0x19d   : > { %v424_v54 = vpop.trf.xlu1 }
 0x1a0   : > { %v409_v47 = vpop.trf.xlu0 }
 0x1a1   : > { %1509 = vmatmul.mubr.msk.bf16.gmra.mrb[12].mxu1 %vm271_vm0, %v406_v44  ;;  %v425_v55 = vpop.trf.xlu1 }
 0x1a2   : > { %547 = vmatprep.mubr.bf16.mxu1 %v2803_v0 }
 0x1a4   : > { %v410_v48 = vpop.trf.xlu0 }
 0x1a5   : > { %v426_v56 = vpop.trf.xlu1 }
 0x1a9   : > { %1510 = vmatmul.mubr.msk.bf16.gmra.mrb[16].mxu1 %vm271_vm0, %v407_v45 }
 0x1aa   : > { %557 = vmatprep.mubr.bf16.mxu1 %v2803_v0 }
 0x1b1   : > { %1511 = vmatmul.mubr.msk.bf16.gmra.mrb[20].mxu1 %vm271_vm0, %v408_v46 }
 0x1b2   : > { %567 = vmatprep.mubr.bf16.mxu1 %v2803_v0 }
 0x1b9   : > { %1512 = vmatmul.mubr.msk.bf16.gmra.mrb[24].mxu1 %vm271_vm0, %v409_v47 }
 0x1ba   : > { %577 = vmatprep.mubr.bf16.mxu1 %v2803_v0 }
 0x1c1   : > { %1513 = vmatmul.mubr.msk.bf16.gmra.mrb[28].mxu1 %vm271_vm0, %v410_v48 }
 0x1c2   : > { %587 = vmatprep.mubr.bf16.mxu1 %v2803_v0 }
 0x1c9   : > { %1514 = vmatmul.mubr.msk.bf16.gmra.mrb[32].mxu1 %vm271_vm0, %v419_v49 }
 0x1ca   : > { %597 = vmatprep.mubr.bf16.mxu1 %v2803_v0 }
 0x1d1   : > { %1515 = vmatmul.mubr.msk.bf16.gmra.mrb[36].mxu1 %vm271_vm0, %v420_v50 }
 0x1d2   : > { %607 = vmatprep.mubr.bf16.mxu1 %v2803_v0 }
 0x1d9   : > { %1516 = vmatmul.mubr.msk.bf16.gmra.mrb[40].mxu1 %vm271_vm0, %v421_v51 }
 0x1da   : > { %617 = vmatprep.mubr.bf16.mxu1 %v2803_v0 }
 0x1e1   : > { %1517 = vmatmul.mubr.msk.bf16.gmra.mrb[44].mxu1 %vm271_vm0, %v422_v52 }
 0x1e2   : > { %627 = vmatprep.mubr.bf16.mxu1 %v2803_v0 }
 0x1e9   : > { %1518 = vmatmul.mubr.msk.bf16.gmra.mrb[48].mxu1 %vm271_vm0, %v423_v53 }
 0x1ea   : > { %637 = vmatprep.mubr.bf16.mxu1 %v2803_v0 }
 0x1f1   : > { %1519 = vmatmul.mubr.msk.bf16.gmra.mrb[52].mxu1 %vm271_vm0, %v424_v54 }
 0x1f2   : > { %647 = vmatprep.mubr.bf16.mxu1 %v2803_v0 }
 0x1f9   : > { %1520 = vmatmul.mubr.msk.bf16.gmra.mrb[56].mxu1 %vm271_vm0, %v425_v55 }
 0x1fa   : > { %657 = vmatprep.mubr.bf16.mxu1 %v2803_v0 }
 0x201   : > { %1521 = vmatmul.mubr.msk.bf16.gmra.mrb[60].mxu1 %vm271_vm0, %v426_v56 }
 0x202   : > { %1313 = vmatprep.mubr.bf16.mxu1 %v2803_v0  ;;  %v2850_v0 = vmov 0  }
 0x25c   : > { %v2144_v57 = vpop.f32.mrb[0].mxu1 }
 0x25d   : > { %v2146_v58 = vpop.f32.mrb[1].mxu1 }
 0x25e   : > { %v2148_v59 = vpop.f32.mrb[2].mxu1  ;;  %v668_v60 = vmax.f32 %v2144_v57, %v2146_v58 }
 0x25f   : > { %v2152_v61 = vpop.f32.mrb[3].mxu1 }
 0x260   : > { %669 = vmax.xlane.f32.xlu0 %v668_v60  ;;  %v671_v62 = vmax.f32 %v2148_v59, %v2152_v61 }
 0x262   : > { %672 = vmax.xlane.f32.xlu1 %v671_v62 }
 0x264   : > { %v2156_v63 = vpop.f32.mrb[4].mxu1 }
 0x265   : > { %v2158_v1 = vpop.f32.mrb[5].mxu1 }
 0x266   : > { %v2160_v2 = vpop.f32.mrb[6].mxu1  ;;  %v674_v3 = vmax.f32 %v2156_v63, %v2158_v1 }
 0x267   : > { %v2164_v4 = vpop.f32.mrb[7].mxu1 }
 0x268   : > { %675 = vmax.xlane.f32.xlu0 %v674_v3  ;;  %v677_v5 = vmax.f32 %v2160_v2, %v2164_v4 }
 0x26a   : > { %678 = vmax.xlane.f32.xlu1 %v677_v5 }
 0x26c   : > { %v2168_v6 = vpop.f32.mrb[8].mxu1 }
 0x26d   : > { %v2170_v7 = vpop.f32.mrb[9].mxu1 }
 0x26e   : > { %v2172_v8 = vpop.f32.mrb[10].mxu1  ;;  %v680_v9 = vmax.f32 %v2168_v6, %v2170_v7 }
 0x26f   : > { %v2176_v10 = vpop.f32.mrb[11].mxu1 }
 0x270   : > { %681 = vmax.xlane.f32.xlu0 %v680_v9  ;;  %v683_v11 = vmax.f32 %v2172_v8, %v2176_v10 }
 0x272   : > { %684 = vmax.xlane.f32.xlu1 %v683_v11 }
 0x274   : > { %v2180_v12 = vpop.f32.mrb[12].mxu1 }
 0x275   : > { %v2182_v13 = vpop.f32.mrb[13].mxu1 }
 0x276   : > { %v2184_v14 = vpop.f32.mrb[14].mxu1  ;;  %v686_v15 = vmax.f32 %v2180_v12, %v2182_v13 }
 0x277   : > { %v2188_v16 = vpop.f32.mrb[15].mxu1 }
 0x278   : > { %687 = vmax.xlane.f32.xlu0 %v686_v15  ;;  %v689_v17 = vmax.f32 %v2184_v14, %v2188_v16 }
 0x27a   : > { %690 = vmax.xlane.f32.xlu1 %v689_v17 }
 0x27c   : > { %v2192_v18 = vpop.f32.mrb[16].mxu1 }
 0x27d   : > { %v2194_v19 = vpop.f32.mrb[17].mxu1 }
 0x27e   : > { %v2196_v20 = vpop.f32.mrb[18].mxu1  ;;  %v692_v21 = vmax.f32 %v2192_v18, %v2194_v19 }
 0x27f   : > { %v2200_v22 = vpop.f32.mrb[19].mxu1 }
 0x280   : > { %693 = vmax.xlane.f32.xlu0 %v692_v21  ;;  %v695_v23 = vmax.f32 %v2196_v20, %v2200_v22 }
 0x282   : > { %696 = vmax.xlane.f32.xlu1 %v695_v23 }
 0x284   : > { %v2204_v24 = vpop.f32.mrb[20].mxu1 }
 0x285   : > { %v2206_v25 = vpop.f32.mrb[21].mxu1 }
 0x286   : > { %v2208_v26 = vpop.f32.mrb[22].mxu1  ;;  %v698_v27 = vmax.f32 %v2204_v24, %v2206_v25 }
 0x287   : > { %v2212_v28 = vpop.f32.mrb[23].mxu1 }
 0x288   : > { %699 = vmax.xlane.f32.xlu0 %v698_v27  ;;  %v701_v29 = vmax.f32 %v2208_v26, %v2212_v28 }
 0x28a   : > { %702 = vmax.xlane.f32.xlu1 %v701_v29 }
 0x28c   : > { %v2216_v30 = vpop.f32.mrb[24].mxu1 }
 0x28d   : > { %v2218_v31 = vpop.f32.mrb[25].mxu1 }
 0x28e   : > { %v2220_v32 = vpop.f32.mrb[26].mxu1  ;;  %v704_v33 = vmax.f32 %v2216_v30, %v2218_v31 }
 0x28f   : > { %v2224_v34 = vpop.f32.mrb[27].mxu1 }
 0x290   : > { %705 = vmax.xlane.f32.xlu0 %v704_v33  ;;  %v707_v35 = vmax.f32 %v2220_v32, %v2224_v34 }
 0x292   : > { %708 = vmax.xlane.f32.xlu1 %v707_v35 }
 0x294   : > { %v2228_v36 = vpop.f32.mrb[28].mxu1 }
 0x295   : > { %v2230_v37 = vpop.f32.mrb[29].mxu1 }
 0x296   : > { %v2232_v38 = vpop.f32.mrb[30].mxu1  ;;  %v710_v39 = vmax.f32 %v2228_v36, %v2230_v37 }
 0x297   : > { %v2236_v40 = vpop.f32.mrb[31].mxu1 }
 0x298   : > { %711 = vmax.xlane.f32.xlu0 %v710_v39  ;;  %v713_v41 = vmax.f32 %v2232_v38, %v2236_v40  ;;  %v1598_v39 = vld [vmem:[%s2798_s1 + $0x20] sm:$0xff]  }
 0x299   : > { %1504 = vmatmul.mubr.msk.bf16.gmra.mrb[16].mxu0 %vm271_vm0, %v1598_v39 }
 0x29a   : > { %714 = vmax.xlane.f32.xlu1 %v713_v41  ;;  %372 = vmatprep.mubr.bf16.mxu0 %v2850_v0 }
 0x29c   : > { %v2240_v42 = vpop.f32.mrb[32].mxu1 }
 0x29d   : > { %v2242_v43 = vpop.f32.mrb[33].mxu1 }
 0x29e   : > { %v2244_v44 = vpop.f32.mrb[34].mxu1  ;;  %v716_v45 = vmax.f32 %v2240_v42, %v2242_v43 }
 0x29f   : > { %v2248_v46 = vpop.f32.mrb[35].mxu1 }
 0x2a0   : > { %2837 = vst [vmem:[#allocation8_spill] sm:$0xff] %v2248_v46  ;;  %717 = vmax.xlane.f32.xlu0 %v716_v45  ;;  %v719_v47 = vmax.f32 %v2244_v44, %v2248_v46 }
 0x2a2   : > { %720 = vmax.xlane.f32.xlu1 %v719_v47 }
 0x2a4   : > { %v2252_v48 = vpop.f32.mrb[36].mxu1 }
 0x2a5   : > { %2838 = vst [vmem:[#allocation9_spill] sm:$0xff] %v2252_v48  ;;  %v2254_v49 = vpop.f32.mrb[37].mxu1 }
 0x2a6   : > { %2839 = vst [vmem:[#allocation10_spill] sm:$0xff] %v2254_v49  ;;  %v2256_v50 = vpop.f32.mrb[38].mxu1  ;;  %v722_v51 = vmax.f32 %v2252_v48, %v2254_v49 }
 0x2a7   : > { %2840 = vst [vmem:[#allocation11_spill] sm:$0xff] %v2256_v50  ;;  %v2260_v52 = vpop.f32.mrb[39].mxu1 }
 0x2a8   : > { %2841 = vst [vmem:[#allocation12_spill] sm:$0xff] %v2260_v52  ;;  %723 = vmax.xlane.f32.xlu0 %v722_v51  ;;  %v725_v53 = vmax.f32 %v2256_v50, %v2260_v52 }
 0x2aa   : > { %726 = vmax.xlane.f32.xlu1 %v725_v53 }
 0x2ac   : > { %v2264_v54 = vpop.f32.mrb[40].mxu1 }
 0x2ad   : > { %2842 = vst [vmem:[#allocation13_spill] sm:$0xff] %v2264_v54  ;;  %v2266_v55 = vpop.f32.mrb[41].mxu1 }
 0x2ae   : > { %2843 = vst [vmem:[#allocation14_spill] sm:$0xff] %v2266_v55  ;;  %v2268_v56 = vpop.f32.mrb[42].mxu1  ;;  %v728_v60 = vmax.f32 %v2264_v54, %v2266_v55 }
 0x2af   : > { %2844 = vst [vmem:[#allocation15_spill] sm:$0xff] %v2268_v56  ;;  %v2272_v62 = vpop.f32.mrb[43].mxu1 }
 0x2b0   : > { %2845 = vst [vmem:[#allocation16_spill] sm:$0xff] %v2272_v62  ;;  %729 = vmax.xlane.f32.xlu0 %v728_v60  ;;  %v731_v3 = vmax.f32 %v2268_v56, %v2272_v62 }
 0x2b2   : > { %732 = vmax.xlane.f32.xlu1 %v731_v3 }
 0x2b4   : > { %v2276_v5 = vpop.f32.mrb[44].mxu1 }
 0x2b5   : > { %2846 = vst [vmem:[#allocation17_spill] sm:$0xff] %v2276_v5  ;;  %v2278_v9 = vpop.f32.mrb[45].mxu1 }
 0x2b6   : > { %2847 = vst [vmem:[#allocation18_spill] sm:$0xff] %v2278_v9  ;;  %v2280_v11 = vpop.f32.mrb[46].mxu1  ;;  %v734_v15 = vmax.f32 %v2276_v5, %v2278_v9 }
 0x2b7   : > { %2848 = vst [vmem:[#allocation19_spill] sm:$0xff] %v2280_v11  ;;  %v2284_v17 = vpop.f32.mrb[47].mxu1 }
 0x2b8   : > { %2849 = vst [vmem:[#allocation20_spill] sm:$0xff] %v2284_v17  ;;  %735 = vmax.xlane.f32.xlu0 %v734_v15  ;;  %v737_v21 = vmax.f32 %v2280_v11, %v2284_v17 }
 0x2ba   : > { %738 = vmax.xlane.f32.xlu1 %v737_v21 }
 0x2bc   : > { %v2288_v23 = vpop.f32.mrb[48].mxu1 }
 0x2bd   : > { %v2290_v27 = vpop.f32.mrb[49].mxu1 }
 0x2be   : > { %v2292_v29 = vpop.f32.mrb[50].mxu1 }
 0x2bf   : > { %v2296_v35 = vpop.f32.mrb[51].mxu1 }
 0x2c4   : > { %v2300_v41 = vpop.f32.mrb[52].mxu1 }
 0x2c5   : > { %v2302_v45 = vpop.f32.mrb[53].mxu1 }
 0x2c6   : > { %v2304_v47 = vpop.f32.mrb[54].mxu1 }
 0x2c7   : > { %v2308_v53 = vpop.f32.mrb[55].mxu1 }
 0x2cc   : > { %v2312_v3 = vpop.f32.mrb[56].mxu1 }
 0x2cd   : > { %v2314_v15 = vpop.f32.mrb[57].mxu1 }
 0x2ce   : > { %v2316_v21 = vpop.f32.mrb[58].mxu1 }
 0x2cf   : > { %v2320_v33 = vpop.f32.mrb[59].mxu1 }
 0x2d4   : > { %v2324_v51 = vpop.f32.mrb[60].mxu1 }
 0x2d5   : > { %v2326_v17 = vpop.f32.mrb[61].mxu1 }
 0x2d6   : > { %v2328_v11 = vpop.f32.mrb[62].mxu1 }
 0x2d7   : > { %v2332_v9 = vpop.f32.mrb[63].mxu1 }
 0x2ed   : > { %v670_v62 = vpop.xlane.xlu0 %669 }
 0x2ee   : > { %v764_v56 = vsub.f32 %v2144_v57, %v670_v62  ;;  %v765_v55 = vsub.f32 %v2146_v58, %v670_v62 }
 0x2ef   : > { %v673_v54 = vpop.xlane.xlu1 %672 }
 0x2f0   : > { %v828_v60 = vmul.f32 1.442695, %v764_v56  ;;  %v830_v52 = vmul.f32 1.442695, %v765_v55  ;;  %v766_v50 = vsub.f32 %v2148_v59, %v673_v54  ;;  %v767_v5 = vsub.f32 %v2152_v61, %v673_v54 }
 0x2f2   : > { %1602 = vpow2.f32 %v828_v60  ;;  %v832_v49 = vmul.f32 1.442695, %v766_v50  ;;  %v834_v48 = vmul.f32 1.442695, %v767_v5 }
 0x2f3   : > { %1604 = vpow2.f32 %v830_v52 }
 0x2f4   : > { %1606 = vpow2.f32 %v832_v49 }
 0x2f5   : > { %1608 = vpow2.f32 %v834_v48  ;;  %v676_v39 = vpop.xlane.xlu0 %675 }
 0x2f6   : > { %v768_v0 = vsub.f32 %v2156_v63, %v676_v39  ;;  %v769_v57 = vsub.f32 %v2158_v1, %v676_v39 }
 0x2f7   : > { %v679_v46 = vpop.xlane.xlu1 %678 }
 0x2f8   : > { %v836_v58 = vmul.f32 1.442695, %v768_v0  ;;  %v838_v62 = vmul.f32 1.442695, %v769_v57  ;;  %v770_v55 = vsub.f32 %v2160_v2, %v679_v46  ;;  %v771_v59 = vsub.f32 %v2164_v4, %v679_v46 }
 0x2fa   : > { %1610 = vpow2.f32 %v836_v58  ;;  %v840_v61 = vmul.f32 1.442695, %v770_v55  ;;  %v842_v54 = vmul.f32 1.442695, %v771_v59  ;;  %v2851_v58 = vmax.f32 %v2288_v23, %v2290_v27 }
 0x2fb   : > { %1612 = vpow2.f32 %v838_v62 }
 0x2fc   : > { %v2349_v50 = vpop.eup %1602  ;;  %1614 = vpow2.f32 %v840_v61 }
 0x2fd   : > { %v2351_v48 = vpop.eup %1604  ;;  %1616 = vpow2.f32 %v842_v54  ;;  %v682_v63 = vpop.xlane.xlu0 %681 }
 0x2fe   : > { %v2353_v49 = vpop.eup %1606  ;;  %v772_v0 = vsub.f32 %v2168_v6, %v682_v63  ;;  %v773_v1 = vsub.f32 %v2170_v7, %v682_v63  ;;  %v956_v2 = vadd.f32 %v2351_v48, %v2349_v50  ;;  %v2852_v63 = vmax.f32 %v2292_v29, %v2296_v35 }
 0x2ff   : > { %v2359_v4 = vpop.eup %1608  ;;  %v685_v46 = vpop.xlane.xlu1 %684 }
 0x300   : > { %v844_v52 = vmul.f32 1.442695, %v772_v0  ;;  %v846_v56 = vmul.f32 1.442695, %v773_v1  ;;  %v774_v5 = vsub.f32 %v2172_v8, %v685_v46  ;;  %v775_v60 = vsub.f32 %v2176_v10, %v685_v46  ;;  %957 = vadd.xlane.f32.xlu0 %v956_v2 }
 0x301   : > { %v959_v39 = vadd.f32 %v2359_v4, %v2353_v49 }
 0x302   : > { %1618 = vpow2.f32 %v844_v52  ;;  %v848_v6 = vmul.f32 1.442695, %v774_v5  ;;  %v850_v57 = vmul.f32 1.442695, %v775_v60  ;;  %v2853_v60 = vmax.f32 %v2300_v41, %v2302_v45 }
 0x303   : > { %1620 = vpow2.f32 %v846_v56  ;;  %960 = vadd.xlane.f32.xlu1 %v959_v39 }
 0x304   : > { %v2365_v7 = vpop.eup %1610  ;;  %1622 = vpow2.f32 %v848_v6  ;;  %741 = vmax.xlane.f32.xlu0 %v2851_v58 }
 0x305   : > { %v2370_v62 = vpop.eup %1612  ;;  %1624 = vpow2.f32 %v850_v57  ;;  %v688_v8 = vpop.xlane.xlu0 %687 }
 0x306   : > { %v2372_v10 = vpop.eup %1614  ;;  %v776_v55 = vsub.f32 %v2180_v12, %v688_v8  ;;  %v777_v59 = vsub.f32 %v2182_v13, %v688_v8  ;;  %v962_v61 = vadd.f32 %v2370_v62, %v2365_v7  ;;  %v1599_v8 = vld [vmem:[%s2798_s1 + $0x28] sm:$0xff]  }
 0x307   : > { %v2378_v54 = vpop.eup %1616  ;;  %744 = vmax.xlane.f32.xlu1 %v2852_v63  ;;  %v691_v0 = vpop.xlane.xlu1 %690  ;;  %1505 = vmatmul.mubr.msk.bf16.gmra.mrb[20].mxu0 %vm271_vm0, %v1599_v8 }
 0x308   : > { %v852_v1 = vmul.f32 1.442695, %v776_v55  ;;  %v854_v2 = vmul.f32 1.442695, %v777_v59  ;;  %v778_v46 = vsub.f32 %v2184_v14, %v691_v0  ;;  %v779_v52 = vsub.f32 %v2188_v16, %v691_v0  ;;  %963 = vadd.xlane.f32.xlu0 %v962_v61 }
 0x309   : > { %v965_v12 = vadd.f32 %v2378_v54, %v2372_v10  ;;  %v2854_v59 = vmax.f32 %v2304_v47, %v2308_v53 }
 0x30a   : > { %1626 = vpow2.f32 %v852_v1  ;;  %v856_v13 = vmul.f32 1.442695, %v778_v46  ;;  %v858_v56 = vmul.f32 1.442695, %v779_v52 }
 0x30b   : > { %1628 = vpow2.f32 %v854_v2  ;;  %966 = vadd.xlane.f32.xlu1 %v965_v12  ;;  %v2855_v12 = vmax.f32 %v2312_v3, %v2314_v15 }
 0x30c   : > { %v2387_v5 = vpop.eup %1618  ;;  %1630 = vpow2.f32 %v856_v13  ;;  %747 = vmax.xlane.f32.xlu0 %v2853_v60 }
 0x30d   : > { %v2392_v39 = vpop.eup %1620  ;;  %1632 = vpow2.f32 %v858_v56  ;;  %v694_v14 = vpop.xlane.xlu0 %693 }
 0x30e   : > { %v2394_v16 = vpop.eup %1622  ;;  %v780_v6 = vsub.f32 %v2192_v18, %v694_v14  ;;  %v781_v57 = vsub.f32 %v2194_v19, %v694_v14  ;;  %v968_v58 = vadd.f32 %v2392_v39, %v2387_v5 }
 0x30f   : > { %v2403_v55 = vpop.eup %1624  ;;  %750 = vmax.xlane.f32.xlu1 %v2854_v59  ;;  %v697_v61 = vpop.xlane.xlu1 %696 }
 0x310   : > { %v860_v63 = vmul.f32 1.442695, %v780_v6  ;;  %v862_v0 = vmul.f32 1.442695, %v781_v57  ;;  %v782_v18 = vsub.f32 %v2196_v20, %v697_v61  ;;  %v783_v19 = vsub.f32 %v2200_v22, %v697_v61  ;;  %969 = vadd.xlane.f32.xlu0 %v968_v58 }
 0x311   : > { %v971_v1 = vadd.f32 %v2403_v55, %v2394_v16  ;;  %v2856_v57 = vmax.f32 %v2316_v21, %v2320_v33 }
 0x312   : > { %1634 = vpow2.f32 %v860_v63  ;;  %v864_v2 = vmul.f32 1.442695, %v782_v18  ;;  %v866_v46 = vmul.f32 1.442695, %v783_v19  ;;  %v2857_v19 = vmax.f32 %v2324_v51, %v2326_v17 }
 0x313   : > { %1636 = vpow2.f32 %v862_v0  ;;  %972 = vadd.xlane.f32.xlu1 %v971_v1 }
 0x314   : > { %v2413_v52 = vpop.eup %1626  ;;  %1638 = vpow2.f32 %v864_v2  ;;  %753 = vmax.xlane.f32.xlu0 %v2855_v12 }
 0x315   : > { %v2418_v20 = vpop.eup %1628  ;;  %1640 = vpow2.f32 %v866_v46  ;;  %v700_v22 = vpop.xlane.xlu0 %699 }
 0x316   : > { %v2420_v13 = vpop.eup %1630  ;;  %v784_v56 = vsub.f32 %v2204_v24, %v700_v22  ;;  %v785_v60 = vsub.f32 %v2206_v25, %v700_v22  ;;  %v974_v14 = vadd.f32 %v2418_v20, %v2413_v52 }
 0x317   : > { %v2426_v6 = vpop.eup %1632  ;;  %756 = vmax.xlane.f32.xlu1 %v2856_v57  ;;  %v703_v58 = vpop.xlane.xlu1 %702 }
 0x318   : > { %v868_v8 = vmul.f32 1.442695, %v784_v56  ;;  %v870_v59 = vmul.f32 1.442695, %v785_v60  ;;  %v786_v61 = vsub.f32 %v2208_v26, %v703_v58  ;;  %v787_v63 = vsub.f32 %v2212_v28, %v703_v58  ;;  %975 = vadd.xlane.f32.xlu0 %v974_v14 }
 0x319   : > { %v977_v24 = vadd.f32 %v2426_v6, %v2420_v13  ;;  %v2858_v56 = vmax.f32 %v2328_v11, %v2332_v9 }
 0x31a   : > { %1642 = vpow2.f32 %v868_v8  ;;  %v872_v25 = vmul.f32 1.442695, %v786_v61  ;;  %v874_v0 = vmul.f32 1.442695, %v787_v63 }
 0x31b   : > { %1644 = vpow2.f32 %v870_v59  ;;  %978 = vadd.xlane.f32.xlu1 %v977_v24 }
 0x31c   : > { %v2435_v18 = vpop.eup %1634  ;;  %1646 = vpow2.f32 %v872_v25  ;;  %759 = vmax.xlane.f32.xlu0 %v2857_v19 }
 0x31d   : > { %v2440_v1 = vpop.eup %1636  ;;  %1648 = vpow2.f32 %v874_v0  ;;  %v706_v26 = vpop.xlane.xlu0 %705 }
 0x31e   : > { %v2442_v28 = vpop.eup %1638  ;;  %v788_v2 = vsub.f32 %v2216_v30, %v706_v26  ;;  %v789_v46 = vsub.f32 %v2218_v31, %v706_v26  ;;  %v980_v12 = vadd.f32 %v2440_v1, %v2435_v18 }
 0x31f   : > { %v2448_v22 = vpop.eup %1640  ;;  %762 = vmax.xlane.f32.xlu1 %v2858_v56  ;;  %v709_v60 = vpop.xlane.xlu1 %708 }
 0x320   : > { %v876_v14 = vmul.f32 1.442695, %v788_v2  ;;  %v878_v57 = vmul.f32 1.442695, %v789_v46  ;;  %v790_v58 = vsub.f32 %v2220_v32, %v709_v60  ;;  %v791_v8 = vsub.f32 %v2224_v34, %v709_v60  ;;  %981 = vadd.xlane.f32.xlu0 %v980_v12 }
 0x321   : > { %v983_v30 = vadd.f32 %v2448_v22, %v2442_v28 }
 0x322   : > { %1650 = vpow2.f32 %v876_v14  ;;  %v880_v31 = vmul.f32 1.442695, %v790_v58  ;;  %v882_v59 = vmul.f32 1.442695, %v791_v8 }
 0x323   : > { %1652 = vpow2.f32 %v878_v57  ;;  %984 = vadd.xlane.f32.xlu1 %v983_v30 }
 0x324   : > { %v2457_v61 = vpop.eup %1642  ;;  %1654 = vpow2.f32 %v880_v31 }
 0x325   : > { %v2459_v63 = vpop.eup %1644  ;;  %1656 = vpow2.f32 %v882_v59  ;;  %v712_v24 = vpop.xlane.xlu0 %711 }
 0x326   : > { %v2461_v25 = vpop.eup %1646  ;;  %v792_v32 = vsub.f32 %v2228_v36, %v712_v24  ;;  %v793_v34 = vsub.f32 %v2230_v37, %v712_v24  ;;  %v986_v0 = vadd.f32 %v2459_v63, %v2457_v61 }
 0x327   : > { %v2467_v19 = vpop.eup %1648  ;;  %v715_v26 = vpop.xlane.xlu1 %714 }
 0x328   : > { %v884_v2 = vmul.f32 1.442695, %v792_v32  ;;  %v886_v46 = vmul.f32 1.442695, %v793_v34  ;;  %v794_v12 = vsub.f32 %v2232_v38, %v715_v26  ;;  %v795_v56 = vsub.f32 %v2236_v40, %v715_v26  ;;  %987 = vadd.xlane.f32.xlu0 %v986_v0  ;;  %v2859_v0 = vld [vmem:[#allocation8_spill] sm:$0xff] }
 0x329   : > { %v989_v60 = vadd.f32 %v2467_v19, %v2461_v25 }
 0x32a   : > { %1658 = vpow2.f32 %v884_v2  ;;  %v888_v36 = vmul.f32 1.442695, %v794_v12  ;;  %v890_v14 = vmul.f32 1.442695, %v795_v56 }
 0x32b   : > { %1660 = vpow2.f32 %v886_v46  ;;  %990 = vadd.xlane.f32.xlu1 %v989_v60 }
 0x32c   : > { %v2473_v37 = vpop.eup %1650  ;;  %1662 = vpow2.f32 %v888_v36 }
 0x32d   : > { %v2475_v57 = vpop.eup %1652  ;;  %1664 = vpow2.f32 %v890_v14  ;;  %v718_v58 = vpop.xlane.xlu0 %717  ;;  %v2863_v14 = vld [vmem:[#allocation10_spill] sm:$0xff] }
 0x32e   : > { %v2477_v8 = vpop.eup %1654  ;;  %v796_v38 = vsub.f32 %v2240_v42, %v718_v58  ;;  %v797_v40 = vsub.f32 %v2242_v43, %v718_v58  ;;  %v992_v30 = vadd.f32 %v2475_v57, %v2473_v37 }
 0x32f   : > { %v2483_v31 = vpop.eup %1656  ;;  %v721_v59 = vpop.xlane.xlu1 %720 }
 0x330   : > { %v892_v24 = vmul.f32 1.442695, %v796_v38  ;;  %v894_v32 = vmul.f32 1.442695, %v797_v40  ;;  %v798_v34 = vsub.f32 %v2244_v44, %v721_v59  ;;  %v799_v26 = vsub.f32 %v2859_v0, %v721_v59  ;;  %993 = vadd.xlane.f32.xlu0 %v992_v30  ;;  %v2862_v44 = vld [vmem:[#allocation9_spill] sm:$0xff]  ;;  %v2866_v0 = vld [vmem:[#allocation12_spill] sm:$0xff] }
 0x331   : > { %v995_v2 = vadd.f32 %v2483_v31, %v2477_v8 }
 0x332   : > { %1666 = vpow2.f32 %v892_v24  ;;  %v896_v42 = vmul.f32 1.442695, %v798_v34  ;;  %v898_v46 = vmul.f32 1.442695, %v799_v26 }
 0x333   : > { %1668 = vpow2.f32 %v894_v32  ;;  %996 = vadd.xlane.f32.xlu1 %v995_v2  ;;  %v2865_v32 = vld [vmem:[#allocation11_spill] sm:$0xff] }
 0x334   : > { %v2489_v43 = vpop.eup %1658  ;;  %1670 = vpow2.f32 %v896_v42 }
 0x335   : > { %2860 = vst [vmem:[#allocation8_spill] sm:$0xff] %v2489_v43  ;;  %v2491_v12 = vpop.eup %1660  ;;  %1672 = vpow2.f32 %v898_v46  ;;  %v724_v56 = vpop.xlane.xlu0 %723 }
 0x336   : > { %v2493_v60 = vpop.eup %1662  ;;  %v800_v36 = vsub.f32 %v2862_v44, %v724_v56  ;;  %v801_v58 = vsub.f32 %v2863_v14, %v724_v56  ;;  %v998_v38 = vadd.f32 %v2491_v12, %v2489_v43  ;;  %v2874_v43 = vld [vmem:[#allocation16_spill] sm:$0xff] }
 0x337   : > { %2861 = vst [vmem:[#allocation21_spill] sm:$0xff] %v2493_v60  ;;  %v2499_v40 = vpop.eup %1664  ;;  %v727_v30 = vpop.xlane.xlu1 %726 }
 0x338   : > { %2864 = vst [vmem:[#allocation9_spill] sm:$0xff] %v2499_v40  ;;  %v900_v59 = vmul.f32 1.442695, %v800_v36  ;;  %v902_v24 = vmul.f32 1.442695, %v801_v58  ;;  %v802_v34 = vsub.f32 %v2865_v32, %v727_v30  ;;  %v803_v26 = vsub.f32 %v2866_v0, %v727_v30  ;;  %999 = vadd.xlane.f32.xlu0 %v998_v38  ;;  %v2870_v58 = vld [vmem:[#allocation13_spill] sm:$0xff] }
 0x339   : > { %v1001_v2 = vadd.f32 %v2499_v40, %v2493_v60  ;;  %v2871_v38 = vld [vmem:[#allocation14_spill] sm:$0xff] }
 0x33a   : > { %1674 = vpow2.f32 %v900_v59  ;;  %v904_v42 = vmul.f32 1.442695, %v802_v34  ;;  %v906_v46 = vmul.f32 1.442695, %v803_v26 }
 0x33b   : > { %1676 = vpow2.f32 %v902_v24  ;;  %1002 = vadd.xlane.f32.xlu1 %v1001_v2  ;;  %v2873_v2 = vld [vmem:[#allocation15_spill] sm:$0xff] }
 0x33c   : > { %v2505_v56 = vpop.eup %1666  ;;  %1678 = vpow2.f32 %v904_v42 }
 0x33d   : > { %2867 = vst [vmem:[#allocation10_spill] sm:$0xff] %v2505_v56  ;;  %v2507_v44 = vpop.eup %1668  ;;  %1680 = vpow2.f32 %v906_v46  ;;  %v730_v36 = vpop.xlane.xlu0 %729 }
 0x33e   : > { %2868 = vst [vmem:[#allocation11_spill] sm:$0xff] %v2507_v44  ;;  %v2509_v14 = vpop.eup %1670  ;;  %v804_v30 = vsub.f32 %v2870_v58, %v730_v36  ;;  %v805_v32 = vsub.f32 %v2871_v38, %v730_v36  ;;  %v1004_v59 = vadd.f32 %v2507_v44, %v2505_v56  ;;  %v2877_v56 = vld [vmem:[#allocation19_spill] sm:$0xff] }
 0x33f   : > { %2869 = vst [vmem:[#allocation12_spill] sm:$0xff] %v2509_v14  ;;  %v2515_v34 = vpop.eup %1672  ;;  %v733_v24 = vpop.xlane.xlu1 %732 }
 0x340   : > { %2872 = vst [vmem:[#allocation13_spill] sm:$0xff] %v2515_v34  ;;  %v908_v0 = vmul.f32 1.442695, %v804_v30  ;;  %v910_v26 = vmul.f32 1.442695, %v805_v32  ;;  %v806_v42 = vsub.f32 %v2873_v2, %v733_v24  ;;  %v807_v60 = vsub.f32 %v2874_v43, %v733_v24  ;;  %1005 = vadd.xlane.f32.xlu0 %v1004_v59  ;;  %v2875_v2 = vld [vmem:[#allocation17_spill] sm:$0xff] }
 0x341   : > { %v1007_v46 = vadd.f32 %v2515_v34, %v2509_v14  ;;  %v2876_v59 = vld [vmem:[#allocation18_spill] sm:$0xff]  ;;  %v2878_v14 = vld [vmem:[#allocation20_spill] sm:$0xff] }
 0x342   : > { %1682 = vpow2.f32 %v908_v0  ;;  %v912_v58 = vmul.f32 1.442695, %v806_v42  ;;  %v914_v40 = vmul.f32 1.442695, %v807_v60 }
 0x343   : > { %1684 = vpow2.f32 %v910_v26  ;;  %1008 = vadd.xlane.f32.xlu1 %v1007_v46 }
 0x344   : > { %v2521_v36 = vpop.eup %1674  ;;  %1686 = vpow2.f32 %v912_v58 }
 0x345   : > { %v2523_v38 = vpop.eup %1676  ;;  %1688 = vpow2.f32 %v914_v40  ;;  %v736_v30 = vpop.xlane.xlu0 %735 }
 0x346   : > { %v2525_v32 = vpop.eup %1678  ;;  %v808_v43 = vsub.f32 %v2875_v2, %v736_v30  ;;  %v809_v24 = vsub.f32 %v2876_v59, %v736_v30  ;;  %v1010_v0 = vadd.f32 %v2523_v38, %v2521_v36 }
 0x347   : > { %v2531_v42 = vpop.eup %1680  ;;  %v739_v60 = vpop.xlane.xlu1 %738 }
 0x348   : > { %v916_v26 = vmul.f32 1.442695, %v808_v43  ;;  %v918_v46 = vmul.f32 1.442695, %v809_v24  ;;  %v810_v58 = vsub.f32 %v2877_v56, %v739_v60  ;;  %v811_v34 = vsub.f32 %v2878_v14, %v739_v60  ;;  %1011 = vadd.xlane.f32.xlu0 %v1010_v0 }
 0x349   : > { %v1013_v40 = vadd.f32 %v2531_v42, %v2525_v32 }
 0x34a   : > { %1690 = vpow2.f32 %v916_v26  ;;  %v920_v2 = vmul.f32 1.442695, %v810_v58  ;;  %v922_v44 = vmul.f32 1.442695, %v811_v34 }
 0x34b   : > { %1692 = vpow2.f32 %v918_v46  ;;  %1014 = vadd.xlane.f32.xlu1 %v1013_v40 }
 0x34c   : > { %v2537_v30 = vpop.eup %1682  ;;  %1694 = vpow2.f32 %v920_v2 }
 0x34d   : > { %2879 = vst [vmem:[#allocation14_spill] sm:$0xff] %v2537_v30  ;;  %v2539_v59 = vpop.eup %1684  ;;  %1696 = vpow2.f32 %v922_v44 }
 0x34e   : > { %v2541_v43 = vpop.eup %1686  ;;  %v1016_v56 = vadd.f32 %v2539_v59, %v2537_v30 }
 0x34f   : > { %2880 = vst [vmem:[#allocation15_spill] sm:$0xff] %v2541_v43  ;;  %v2545_v14 = vpop.eup %1688 }
 0x350   : > { %2881 = vst [vmem:[#allocation16_spill] sm:$0xff] %v2545_v14  ;;  %1017 = vadd.xlane.f32.xlu0 %v1016_v56  ;;  %v1019_v24 = vadd.f32 %v2545_v14, %v2541_v43 }
 0x352   : > { %1020 = vadd.xlane.f32.xlu1 %v1019_v24 }
 0x354   : > { %v2549_v34 = vpop.eup %1690 }
 0x355   : > { %2882 = vst [vmem:[#allocation17_spill] sm:$0xff] %v2549_v34  ;;  %v2551_v0 = vpop.eup %1692 }
 0x356   : > { %2883 = vst [vmem:[#allocation18_spill] sm:$0xff] %v2551_v0  ;;  %v2553_v60 = vpop.eup %1694  ;;  %v1022_v44 = vadd.f32 %v2551_v0, %v2549_v34 }
 0x357   : > { %2884 = vst [vmem:[#allocation19_spill] sm:$0xff] %v2553_v60  ;;  %v2557_v26 = vpop.eup %1696 }
 0x358   : > { %2885 = vst [vmem:[#allocation20_spill] sm:$0xff] %v2557_v26  ;;  %1023 = vadd.xlane.f32.xlu0 %v1022_v44  ;;  %v1025_v46 = vadd.f32 %v2557_v26, %v2553_v60 }
 0x35a   : > { %1026 = vadd.xlane.f32.xlu1 %v1025_v46 }
 0x38d   : > { %v958_v58 = vpop.xlane.xlu0 %957 }
 0x38e   : > { %1698 = vrcp.f32 %v958_v58 }
 0x390   : > { %v961_v40 = vpop.xlane.xlu1 %960 }
 0x391   : > { %1700 = vrcp.f32 %v961_v40  ;;  %v742_v2 = vpop.xlane.xlu0 %741 }
 0x392   : > { %v812_v56 = vsub.f32 %v2288_v23, %v742_v2  ;;  %v813_v24 = vsub.f32 %v2290_v27, %v742_v2 }
 0x394   : > { %v924_v30 = vmul.f32 1.442695, %v812_v56  ;;  %v926_v43 = vmul.f32 1.442695, %v813_v24  ;;  %v745_v14 = vpop.xlane.xlu1 %744 }
 0x395   : > { %v814_v34 = vsub.f32 %v2292_v29, %v745_v14  ;;  %v815_v44 = vsub.f32 %v2296_v35, %v745_v14  ;;  %v964_v0 = vpop.xlane.xlu0 %963 }
 0x396   : > { %1702 = vpow2.f32 %v924_v30 }
 0x397   : > { %1704 = vpow2.f32 %v926_v43  ;;  %v928_v46 = vmul.f32 1.442695, %v814_v34  ;;  %v930_v60 = vmul.f32 1.442695, %v815_v44 }
 0x398   : > { %v1699_v58 = vpop.eup %1698  ;;  %1706 = vrcp.f32 %v964_v0  ;;  %v967_v40 = vpop.xlane.xlu1 %966 }
 0x399   : > { %1708 = vpow2.f32 %v928_v46  ;;  %v748_v26 = vpop.xlane.xlu0 %747  ;;  %v1085_v29 = vmul.f32 %v1699_v58, %v2351_v48  ;;  %v1084_v35 = vmul.f32 %v1699_v58, %v2349_v50 }
 0x39a   : > { %1710 = vpow2.f32 %v930_v60  ;;  %v816_v23 = vsub.f32 %v2300_v41, %v748_v26  ;;  %v817_v27 = vsub.f32 %v2302_v45, %v748_v26 }
 0x39b   : > { %v1701_v2 = vpop.eup %1700  ;;  %1712 = vrcp.f32 %v967_v40 }
 0x39c   : > { %v932_v30 = vmul.f32 1.442695, %v816_v23  ;;  %v934_v43 = vmul.f32 1.442695, %v817_v27  ;;  %v751_v14 = vpop.xlane.xlu1 %750  ;;  %v1087_v34 = vmul.f32 %v1701_v2, %v2359_v4  ;;  %v1086_v0 = vmul.f32 %v1701_v2, %v2353_v49 }
 0x39d   : > { %v818_v56 = vsub.f32 %v2304_v47, %v751_v14  ;;  %v819_v60 = vsub.f32 %v2308_v53, %v751_v14  ;;  %v970_v41 = vpop.xlane.xlu0 %969 }
 0x39e   : > { %1714 = vpow2.f32 %v932_v30  ;;  %v1149_v45 = vpack.c.bf16 %v1087_v34, %v1085_v29  ;;  %v1148_v26 = vpack.c.bf16 %v1086_v0, %v1084_v35 }
 0x39f   : > { %1716 = vpow2.f32 %v934_v43  ;;  %v936_v24 = vmul.f32 1.442695, %v818_v56  ;;  %v938_v48 = vmul.f32 1.442695, %v819_v60 }
 0x3a0   : > { %v2573_v44 = vpop.eup %1702  ;;  %1718 = vrcp.f32 %v970_v41  ;;  %1180 = vmatprep.subr.bf16.mxu0 %v1149_v45  ;;  %v973_v50 = vpop.xlane.xlu1 %972 }
 0x3a1   : > { %v2575_v46 = vpop.eup %1704  ;;  %1720 = vpow2.f32 %v936_v24  ;;  %1181 = vmatpush1.bf16.xpose.msra.mxu0 %v1148_v26  ;;  %v754_v49 = vpop.xlane.xlu0 %753 }
 0x3a2   : > { %v1707_v47 = vpop.eup %1706  ;;  %1722 = vpow2.f32 %v938_v48  ;;  %v820_v53 = vsub.f32 %v2312_v3, %v754_v49  ;;  %v821_v4 = vsub.f32 %v2314_v15, %v754_v49  ;;  %v1028_v58 = vadd.f32 %v2575_v46, %v2573_v44 }
 0x3a3   : > { %v2581_v40 = vpop.eup %1708  ;;  %1724 = vrcp.f32 %v973_v50  ;;  %v1089_v14 = vmul.f32 %v1707_v47, %v2370_v62  ;;  %v1088_v0 = vmul.f32 %v1707_v47, %v2365_v7 }
 0x3a4   : > { %v2583_v23 = vpop.eup %1710  ;;  %v940_v27 = vmul.f32 1.442695, %v820_v53  ;;  %v942_v2 = vmul.f32 1.442695, %v821_v4  ;;  %v757_v29 = vpop.xlane.xlu1 %756  ;;  %1029 = vadd.xlane.f32.xlu0 %v1028_v58 }
 0x3a5   : > { %v1713_v35 = vpop.eup %1712  ;;  %v822_v30 = vsub.f32 %v2316_v21, %v757_v29  ;;  %v823_v43 = vsub.f32 %v2320_v33, %v757_v29  ;;  %v976_v3 = vpop.xlane.xlu0 %975  ;;  %v1031_v15 = vadd.f32 %v2583_v23, %v2581_v40 }
 0x3a6   : > { %1726 = vpow2.f32 %v940_v27  ;;  %v1091_v34 = vmul.f32 %v1713_v35, %v2378_v54  ;;  %v1090_v56 = vmul.f32 %v1713_v35, %v2372_v10 }
 0x3a7   : > { %1728 = vpow2.f32 %v942_v2  ;;  %v944_v60 = vmul.f32 1.442695, %v822_v30  ;;  %v946_v41 = vmul.f32 1.442695, %v823_v43  ;;  %1032 = vadd.xlane.f32.xlu1 %v1031_v15 }
 0x3a8   : > { %v2593_v21 = vpop.eup %1714  ;;  %1730 = vrcp.f32 %v976_v3  ;;  %v1151_v33 = vpack.c.bf16 %v1091_v34, %v1089_v14  ;;  %v979_v45 = vpop.xlane.xlu1 %978  ;;  %v1150_v26 = vpack.c.bf16 %v1090_v56, %v1088_v0 }
 0x3a9   : > { %v2595_v24 = vpop.eup %1716  ;;  %1732 = vpow2.f32 %v944_v60  ;;  %v760_v62 = vpop.xlane.xlu0 %759 }
 0x3aa   : > { %v1719_v48 = vpop.eup %1718  ;;  %1734 = vpow2.f32 %v946_v41  ;;  %1182 = vmatprep.subr.bf16.mxu0 %v1151_v33  ;;  %v824_v7 = vsub.f32 %v2324_v51, %v760_v62  ;;  %v825_v10 = vsub.f32 %v2326_v17, %v760_v62  ;;  %v1034_v54 = vadd.f32 %v2595_v24, %v2593_v21 }
 0x3ab   : > { %v2601_v50 = vpop.eup %1720  ;;  %1736 = vrcp.f32 %v979_v45  ;;  %1183 = vmatpush1.bf16.xpose.msra.mxu0 %v1150_v26  ;;  %v1093_v29 = vmul.f32 %v1719_v48, %v2392_v39  ;;  %v1092_v30 = vmul.f32 %v1719_v48, %v2387_v5 }
 0x3ac   : > { %v2603_v49 = vpop.eup %1722  ;;  %v948_v47 = vmul.f32 1.442695, %v824_v7  ;;  %v950_v53 = vmul.f32 1.442695, %v825_v10  ;;  %1035 = vadd.xlane.f32.xlu0 %v1034_v54  ;;  %v763_v4 = vpop.xlane.xlu1 %762 }
 0x3ad   : > { %v1725_v58 = vpop.eup %1724  ;;  %v826_v27 = vsub.f32 %v2328_v11, %v763_v4  ;;  %v827_v51 = vsub.f32 %v2332_v9, %v763_v4  ;;  %v982_v2 = vpop.xlane.xlu0 %981  ;;  %v1037_v17 = vadd.f32 %v2603_v49, %v2601_v50 }
 0x3ae   : > { %1738 = vpow2.f32 %v948_v47  ;;  %v1095_v35 = vmul.f32 %v1725_v58, %v2403_v55  ;;  %v1094_v43 = vmul.f32 %v1725_v58, %v2394_v16 }
 0x3af   : > { %1740 = vpow2.f32 %v950_v53  ;;  %v952_v3 = vmul.f32 1.442695, %v826_v27  ;;  %v954_v15 = vmul.f32 1.442695, %v827_v51  ;;  %1038 = vadd.xlane.f32.xlu1 %v1037_v17 }
 0x3b0   : > { %v2613_v11 = vpop.eup %1726  ;;  %1742 = vrcp.f32 %v982_v2  ;;  %v1153_v9 = vpack.c.bf16 %v1095_v35, %v1093_v29  ;;  %v985_v14 = vpop.xlane.xlu1 %984  ;;  %v1152_v34 = vpack.c.bf16 %v1094_v43, %v1092_v30 }
 0x3b1   : > { %v2615_v0 = vpop.eup %1728  ;;  %1744 = vpow2.f32 %v952_v3 }
 0x3b2   : > { %v1731_v39 = vpop.eup %1730  ;;  %1746 = vpow2.f32 %v954_v15  ;;  %1184 = vmatprep.subr.bf16.mxu0 %v1153_v9  ;;  %v1040_v5 = vadd.f32 %v2615_v0, %v2613_v11 }
 0x3b3   : > { %v2619_v16 = vpop.eup %1732  ;;  %1748 = vrcp.f32 %v985_v14  ;;  %1185 = vmatpush1.bf16.xpose.msra.mxu0 %v1152_v34  ;;  %v1097_v33 = vmul.f32 %v1731_v39, %v2418_v20  ;;  %v1096_v26 = vmul.f32 %v1731_v39, %v2413_v52 }
 0x3b4   : > { %v2621_v55 = vpop.eup %1734  ;;  %1041 = vadd.xlane.f32.xlu0 %v1040_v5 }
 0x3b5   : > { %v1737_v56 = vpop.eup %1736  ;;  %v988_v60 = vpop.xlane.xlu0 %987  ;;  %v1043_v41 = vadd.f32 %v2621_v55, %v2619_v16 }
 0x3b6   : > { %v1099_v45 = vmul.f32 %v1737_v56, %v2426_v6  ;;  %v1098_v62 = vmul.f32 %v1737_v56, %v2420_v13  ;;  %1750 = vrcp.f32 %v988_v60 }
 0x3b7   : > { %1044 = vadd.xlane.f32.xlu1 %v1043_v41 }
 0x3b8   : > { %v2629_v48 = vpop.eup %1738  ;;  %v1155_v7 = vpack.c.bf16 %v1099_v45, %v1097_v33  ;;  %v991_v10 = vpop.xlane.xlu1 %990  ;;  %v1154_v54 = vpack.c.bf16 %v1098_v62, %v1096_v26 }
 0x3b9   : > { %v2631_v47 = vpop.eup %1740  ;;  %1752 = vrcp.f32 %v991_v10  ;;  %v2887_v10 = vld [vmem:[#allocation21_spill] sm:$0xff] }
 0x3ba   : > { %v1743_v53 = vpop.eup %1742  ;;  %1186 = vmatprep.subr.bf16.mxu0 %v1155_v7  ;;  %v1046_v20 = vadd.f32 %v2631_v47, %v2629_v48  ;;  %v2886_v7 = vld [vmem:[#allocation9_spill] sm:$0xff] }
 0x3bb   : > { %v2635_v6 = vpop.eup %1744  ;;  %1187 = vmatpush1.bf16.xpose.msra.mxu0 %v1154_v54  ;;  %v1101_v27 = vmul.f32 %v1743_v53, %v2440_v1  ;;  %v1100_v2 = vmul.f32 %v1743_v53, %v2435_v18 }
 0x3bc   : > { %v2637_v52 = vpop.eup %1746  ;;  %1047 = vadd.xlane.f32.xlu0 %v1046_v20  ;;  %v2657_v20 = vpop.f32.mrb[16].mxu0 }
 0x3bd   : > { %v1749_v13 = vpop.eup %1748  ;;  %v994_v4 = vpop.xlane.xlu0 %993  ;;  %v1049_v58 = vadd.f32 %v2637_v52, %v2635_v6 }
 0x3be   : > { %v1103_v51 = vmul.f32 %v1749_v13, %v2448_v22  ;;  %v1102_v17 = vmul.f32 %v1749_v13, %v2442_v28  ;;  %1754 = vrcp.f32 %v994_v4  ;;  %v366_v13 = vpop.f32.mrb[17].mxu0 }
 0x3bf   : > { %1050 = vadd.xlane.f32.xlu1 %v1049_v58  ;;  %v2659_v58 = vpop.f32.mrb[18].mxu0 }
 0x3c0   : > { %v1157_v29 = vpack.c.bf16 %v1103_v51, %v1101_v27  ;;  %v997_v35 = vpop.xlane.xlu1 %996  ;;  %v1156_v30 = vpack.c.bf16 %v1102_v17, %v1100_v2  ;;  %v1751_v43 = vpop.eup %1750  ;;  %v2889_v17 = vld [vmem:[#allocation11_spill] sm:$0xff] }
 0x3c1   : > { %1756 = vrcp.f32 %v997_v35  ;;  %v1105_v15 = vmul.f32 %v1751_v43, %v2459_v63  ;;  %v1104_v18 = vmul.f32 %v1751_v43, %v2457_v61  ;;  %v2890_v35 = vld [vmem:[#allocation13_spill] sm:$0xff]  ;;  %v2891_v43 = vld [vmem:[#allocation12_spill] sm:$0xff] }
 0x3c2   : > { %1188 = vmatprep.subr.bf16.mxu0 %v1157_v29 }
 0x3c3   : > { %v1753_v3 = vpop.eup %1752  ;;  %1189 = vmatpush1.bf16.xpose.msra.mxu0 %v1156_v30 }
 0x3c4   : > { %v1107_v1 = vmul.f32 %v1753_v3, %v2467_v19  ;;  %v1106_v22 = vmul.f32 %v1753_v3, %v2461_v25 }
 0x3c5   : > { %v1000_v9 = vpop.xlane.xlu0 %999 }
 0x3c6   : > { %v1159_v28 = vpack.c.bf16 %v1107_v1, %v1105_v15  ;;  %1758 = vrcp.f32 %v1000_v9  ;;  %v1158_v14 = vpack.c.bf16 %v1106_v22, %v1104_v18  ;;  %v370_v15 = vpop.f32.mrb[19].mxu0  ;;  %v2892_v22 = vld [vmem:[#allocation10_spill] sm:$0xff] }
 0x3c7   : > { %v392_v18 = vpack.c.bf16 %v370_v15, %v366_v13 }
 0x3c8   : > { %1190 = vmatprep.subr.bf16.mxu0 %v1159_v28  ;;  %v1003_v34 = vpop.xlane.xlu1 %1002  ;;  %v1755_v39 = vpop.eup %1754 }
 0x3c9   : > { %1760 = vrcp.f32 %v1003_v34  ;;  %v1109_v56 = vmul.f32 %v1755_v39, %v2475_v57  ;;  %v1108_v25 = vmul.f32 %v1755_v39, %v2473_v37  ;;  %1212 = vmatprep.mubr.bf16.mxu0 %v392_v18 }
 0x3cb   : > { %v1757_v5 = vpop.eup %1756  ;;  %1191 = vmatpush1.bf16.xpose.msra.mxu0 %v1158_v14 }
 0x3cc   : > { %v1111_v63 = vmul.f32 %v1757_v5, %v2483_v31  ;;  %v1110_v19 = vmul.f32 %v1757_v5, %v2477_v8  ;;  %v2888_v8 = vld [vmem:[#allocation8_spill] sm:$0xff] }
 0x3cd   : > { %v1006_v60 = vpop.xlane.xlu0 %1005 }
 0x3ce   : > { %v1161_v41 = vpack.c.bf16 %v1111_v63, %v1109_v56  ;;  %1762 = vrcp.f32 %v1006_v60  ;;  %v1160_v61 = vpack.c.bf16 %v1110_v19, %v1108_v25 }
 0x3d0   : > { %1192 = vmatprep.subr.bf16.mxu0 %v1161_v41  ;;  %v1009_v33 = vpop.xlane.xlu1 %1008  ;;  %v1759_v45 = vpop.eup %1758 }
 0x3d1   : > { %1764 = vrcp.f32 %v1009_v33  ;;  %v1113_v62 = vmul.f32 %v1759_v45, %v2491_v12  ;;  %v1112_v53 = vmul.f32 %v1759_v45, %v2888_v8  ;;  %v391_v12 = vpack.c.bf16 %v2659_v58, %v2657_v20 }
 0x3d3   : > { %v1761_v26 = vpop.eup %1760  ;;  %1193 = vmatpush1.bf16.xpose.msra.mxu0 %v1160_v61 }
 0x3d4   : > { %v1115_v57 = vmul.f32 %v1761_v26, %v2886_v7  ;;  %v1114_v31 = vmul.f32 %v1761_v26, %v2887_v10  ;;  %v2893_v10 = vld [vmem:[#allocation16_spill] sm:$0xff] }
 0x3d5   : > { %v1012_v54 = vpop.xlane.xlu0 %1011 }
 0x3d6   : > { %v1163_v37 = vpack.c.bf16 %v1115_v57, %v1113_v62  ;;  %1766 = vrcp.f32 %v1012_v54  ;;  %v1162_v4 = vpack.c.bf16 %v1114_v31, %v1112_v53  ;;  %v2894_v54 = vld [vmem:[#allocation15_spill] sm:$0xff] }
 0x3d8   : > { %1194 = vmatprep.subr.bf16.mxu0 %v1163_v37  ;;  %v1015_v27 = vpop.xlane.xlu1 %1014  ;;  %v1763_v51 = vpop.eup %1762  ;;  %v2895_v37 = vld [vmem:[#allocation14_spill] sm:$0xff] }
 0x3d9   : > { %1768 = vrcp.f32 %v1015_v27  ;;  %v1117_v29 = vmul.f32 %v1763_v51, %v2889_v17  ;;  %v1116_v9 = vmul.f32 %v1763_v51, %v2892_v22 }
 0x3da   : > { %v2667_v56 = vpop.f32.mrb[20].mxu0 }
 0x3db   : > { %v1765_v2 = vpop.eup %1764  ;;  %1195 = vmatpush1.bf16.xpose.msra.mxu0 %v1162_v4  ;;  %v2672_v25 = vpop.f32.mrb[21].mxu0 }
 0x3dc   : > { %v1119_v30 = vmul.f32 %v1765_v2, %v2890_v35  ;;  %v1118_v3 = vmul.f32 %v1765_v2, %v2891_v43  ;;  %v2675_v33 = vpop.f32.mrb[22].mxu0  ;;  %v2896_v2 = vld [vmem:[#allocation18_spill] sm:$0xff] }
 0x3dd   : > { %v1018_v1 = vpop.xlane.xlu0 %1017  ;;  %v393_v26 = vpack.c.bf16 %v2675_v33, %v2667_v56  ;;  %v2679_v62 = vpop.f32.mrb[23].mxu0 }
 0x3de   : > { %1770 = vrcp.f32 %v1018_v1  ;;  %v1165_v28 = vpack.c.bf16 %v1119_v30, %v1117_v29  ;;  %v1164_v34 = vpack.c.bf16 %v1118_v3, %v1116_v9  ;;  %v2897_v29 = vld [vmem:[#allocation20_spill] sm:$0xff]  ;;  %v2898_v30 = vld [vmem:[#allocation19_spill] sm:$0xff] }
 0x3df   : > { %v1021_v14 = vpop.xlane.xlu1 %1020 }
 0x3e0   : > { %1196 = vmatprep.subr.bf16.mxu0 %v1165_v28  ;;  %1772 = vrcp.f32 %v1021_v14  ;;  %v1767_v39 = vpop.eup %1766 }
 0x3e1   : > { %v1121_v63 = vmul.f32 %v1767_v39, %v2523_v38  ;;  %v1120_v61 = vmul.f32 %v1767_v39, %v2521_v36 }
 0x3e3   : > { %v1769_v5 = vpop.eup %1768  ;;  %1197 = vmatpush1.bf16.xpose.msra.mxu0 %v1164_v34 }
 0x3e4   : > { %v1123_v19 = vmul.f32 %v1769_v5, %v2531_v42  ;;  %v1122_v60 = vmul.f32 %v1769_v5, %v2525_v32  ;;  %v394_v42 = vpack.c.bf16 %v2679_v62, %v2672_v25 }
 0x3e5   : > { %v1024_v41 = vpop.xlane.xlu0 %1023 }
 0x3e6   : > { %1774 = vrcp.f32 %v1024_v41  ;;  %v1167_v45 = vpack.c.bf16 %v1123_v19, %v1121_v63  ;;  %v1166_v38 = vpack.c.bf16 %v1122_v60, %v1120_v61 }
 0x3e7   : > { %v1027_v7 = vpop.xlane.xlu1 %1026 }
 0x3e8   : > { %v1771_v32 = vpop.eup %1770  ;;  %1198 = vmatprep.subr.bf16.mxu0 %v1167_v45  ;;  %1776 = vrcp.f32 %v1027_v7 }
 0x3e9   : > { %v1125_v36 = vmul.f32 %v1771_v32, %v2539_v59  ;;  %v1124_v13 = vmul.f32 %v1771_v32, %v2895_v37  ;;  %v2899_v59 = vld [vmem:[#allocation17_spill] sm:$0xff] }
 0x3ea   : > { %v1773_v57 = vpop.eup %1772 }
 0x3eb   : > { %1199 = vmatpush1.bf16.xpose.msra.mxu0 %v1166_v38  ;;  %v1127_v31 = vmul.f32 %v1773_v57, %v2893_v10  ;;  %v1126_v8 = vmul.f32 %v1773_v57, %v2894_v54 }
 0x3ed   : > { %v1169_v53 = vpack.c.bf16 %v1127_v31, %v1125_v36  ;;  %v1168_v4 = vpack.c.bf16 %v1126_v8, %v1124_v13 }
 0x3ef   : > { %1200 = vmatprep.subr.bf16.mxu0 %v1169_v53 }
 0x3f0   : > { %v1775_v27 = vpop.eup %1774 }
 0x3f1   : > { %v1129_v17 = vmul.f32 %v1775_v27, %v2896_v2  ;;  %v1128_v15 = vmul.f32 %v1775_v27, %v2899_v59 }
 0x3f2   : > { %v1777_v51 = vpop.eup %1776 }
 0x3f3   : > { %1201 = vmatpush1.bf16.xpose.msra.mxu0 %v1168_v4  ;;  %v1131_v35 = vmul.f32 %v1777_v51, %v2897_v29  ;;  %v1130_v43 = vmul.f32 %v1777_v51, %v2898_v30  ;;  %v1600_v29 = vld [vmem:[%s2799_s2] sm:$0xff]   ;;  %v1601_v30 = vld [vmem:[%s2799_s2 + $0x8] sm:$0xff]  }
 0x3f5   : > { %v1171_v3 = vpack.c.bf16 %v1131_v35, %v1129_v17  ;;  %v1170_v1 = vpack.c.bf16 %v1130_v43, %v1128_v15  ;;  %v2900_v35 = vmov 0  }
 0x3f7   : > { %1202 = vmatprep.subr.bf16.mxu0 %v1171_v3 }
 0x3fb   : > { %1203 = vmatpush1.bf16.xpose.msra.mxu0 %v1170_v1 }
 0x431   : > { %v1030_v22 = vpop.xlane.xlu0 %1029 }
 0x432   : > { %1778 = vrcp.f32 %v1030_v22 }
 0x434   : > { %v1033_v9 = vpop.xlane.xlu1 %1032 }
 0x435   : > { %1780 = vrcp.f32 %v1033_v9 }
 0x439   : > { %v1036_v18 = vpop.xlane.xlu0 %1035 }
 0x43a   : > { %1782 = vrcp.f32 %v1036_v18 }
 0x43c   : > { %v1039_v28 = vpop.xlane.xlu1 %1038  ;;  %v1779_v14 = vpop.eup %1778 }
 0x43d   : > { %1784 = vrcp.f32 %v1039_v28  ;;  %v1133_v39 = vmul.f32 %v1779_v14, %v2575_v46  ;;  %v1132_v63 = vmul.f32 %v1779_v14, %v2573_v44 }
 0x43f   : > { %v1781_v34 = vpop.eup %1780 }
 0x440   : > { %v1135_v5 = vmul.f32 %v1781_v34, %v2583_v23  ;;  %v1134_v19 = vmul.f32 %v1781_v34, %v2581_v40 }
 0x441   : > { %v1042_v60 = vpop.xlane.xlu0 %1041 }
 0x442   : > { %v1173_v41 = vpack.c.bf16 %v1135_v5, %v1133_v39  ;;  %v1172_v61 = vpack.c.bf16 %v1134_v19, %v1132_v63  ;;  %1786 = vrcp.f32 %v1042_v60 }
 0x444   : > { %1204 = vmatprep.subr.bf16.mxu0 %v1173_v41  ;;  %v1045_v45 = vpop.xlane.xlu1 %1044  ;;  %v1783_v7 = vpop.eup %1782 }
 0x445   : > { %1788 = vrcp.f32 %v1045_v45  ;;  %1205 = vmatpush1.bf16.xpose.msra.mxu0 %v1172_v61  ;;  %v1137_v32 = vmul.f32 %v1783_v7, %v2595_v24  ;;  %v1136_v23 = vmul.f32 %v1783_v7, %v2593_v21 }
 0x447   : > { %v1785_v38 = vpop.eup %1784 }
 0x448   : > { %v1139_v46 = vmul.f32 %v1785_v38, %v2603_v49  ;;  %v1138_v44 = vmul.f32 %v1785_v38, %v2601_v50 }
 0x449   : > { %v1048_v57 = vpop.xlane.xlu0 %1047 }
 0x44a   : > { %v1175_v40 = vpack.c.bf16 %v1139_v46, %v1137_v32  ;;  %v1174_v36 = vpack.c.bf16 %v1138_v44, %v1136_v23  ;;  %1790 = vrcp.f32 %v1048_v57 }
 0x44c   : > { %1206 = vmatprep.subr.bf16.mxu0 %v1175_v40  ;;  %v1051_v10 = vpop.xlane.xlu1 %1050  ;;  %v1787_v31 = vpop.eup %1786 }
 0x44d   : > { %1792 = vrcp.f32 %v1051_v10  ;;  %1207 = vmatpush1.bf16.xpose.msra.mxu0 %v1174_v36  ;;  %v1141_v8 = vmul.f32 %v1787_v31, %v2615_v0  ;;  %v1140_v49 = vmul.f32 %v1787_v31, %v2613_v11  ;;  %v1242_v11 = vld [vmem:[%s2800_s3 + $0x8] sm:$0xff] }
 0x44e   : > { %1252 = vperm.xlu1 %1593, %v1242_v11  }
 0x44f   : > { %v1789_v54 = vpop.eup %1788 }
 0x450   : > { %v1143_v24 = vmul.f32 %v1789_v54, %v2621_v55  ;;  %v1142_v21 = vmul.f32 %v1789_v54, %v2619_v16  ;;  %v1241_v16 = vld [vmem:[%s2800_s3] sm:$0xff] }
 0x451   : > { %1247 = vperm.xlu0 %1592, %v1241_v16   ;;  %v1826_v16 = vld [vmem:[%s2074_s22] sm:$0xff] }
 0x452   : > { %v1177_v53 = vpack.c.bf16 %v1143_v24, %v1141_v8  ;;  %v1176_v50 = vpack.c.bf16 %v1142_v21, %v1140_v49 }
 0x454   : > { %1208 = vmatprep.subr.bf16.mxu0 %v1177_v53  ;;  %v1791_v37 = vpop.eup %1790 }
 0x455   : > { %1209 = vmatpush1.bf16.xpose.msra.mxu0 %v1176_v50  ;;  %v1145_v4 = vmul.f32 %v1791_v37, %v2631_v47  ;;  %v1144_v51 = vmul.f32 %v1791_v37, %v2629_v48  ;;  %v1243_v48 = vld [vmem:[%s2800_s3 + $0x10] sm:$0xff]  ;;  %v1244_v47 = vld [vmem:[%s2800_s3 + $0x18] sm:$0xff] }
 0x456   : > { %1257 = vperm.xlu1 %1593, %v1243_v48  }
 0x457   : > { %v1793_v13 = vpop.eup %1792 }
 0x458   : > { %v1147_v27 = vmul.f32 %v1793_v13, %v2637_v52  ;;  %v1146_v0 = vmul.f32 %v1793_v13, %v2635_v6 }
 0x45a   : > { %v1179_v2 = vpack.c.bf16 %v1147_v27, %v1145_v4  ;;  %v1178_v55 = vpack.c.bf16 %v1146_v0, %v1144_v51  ;;  %1262 = vperm.xlu1 %1593, %v1244_v47  }
 0x45c   : > { %1210 = vmatprep.subr.bf16.mxu0 %v1179_v2 }
 0x45d   : > { %1211 = vmatpush1.bf16.xpose.msra.mxu0 %v1178_v55 }
 0x464   : > { %1213 = vmatmul.mubr.bf16.vlgmr.msra.gmra.mrb[24].mxu0 %v391_v12 }
 0x465   : > { %1222 = vmatprep.mubr.bf16.mxu0 %v394_v42 }
 0x46c   : > { %1223 = vmatmul.mubr.bf16.gmra.mrb[28].mxu0 %v393_v26 }
 0x4cd   : > { %v1253_v43 = vpop.permute.xlu1 %1252 }
 0x4d0   : > { %v1248_v3 = vpop.permute.xlu0 %1247 }
 0x4d5   : > { %v1258_v34 = vpop.permute.xlu1 %1257 }
 0x4d9   : > { %v1263_v38 = vpop.permute.xlu1 %1262 }
 0x537   : > { %v1214_v6 = vpop.f32.mrb[24].mxu0 }
 0x538   : > { %v1216_v52 = vpop.f32.mrb[25].mxu0 }
 0x539   : > { %v1218_v20 = vpop.f32.mrb[26].mxu0 }
 0x53a   : > { %v1237_v58 = vpack.c.bf16 %v1218_v20, %v1214_v6  ;;  %v1220_v12 = vpop.f32.mrb[27].mxu0  ;;  %v1827_v6 = vld [vmem:[%s2074_s22 + $0x8] sm:$0xff] }
 0x53b   : > { %v1238_v56 = vpack.c.bf16 %v1220_v12, %v1216_v52 }
 0x53d   : > { %1281 = vmatprep.subr.bf16.mxu1 %v1238_v56  ;;  %v1829_v56 = vld [vmem:[%s2074_s22 + $0x18] sm:$0xff] }
 0x53e   : > { %1282 = vmatpush1.bf16.msra.mxu1 %v1237_v58  ;;  %v1828_v58 = vld [vmem:[%s2074_s22 + $0x10] sm:$0xff] }
 0x53f   : > { %v1224_v25 = vpop.f32.mrb[28].mxu0 }
 0x540   : > { %v1226_v33 = vpop.f32.mrb[29].mxu0 }
 0x541   : > { %v1228_v26 = vpop.f32.mrb[30].mxu0 }
 0x542   : > { %v1239_v62 = vpack.c.bf16 %v1228_v26, %v1224_v25  ;;  %v1230_v42 = vpop.f32.mrb[31].mxu0 }
 0x543   : > { %v1240_v17 = vpack.c.bf16 %v1230_v42, %v1226_v33 }
 0x545   : > { %1283 = vmatprep.subr.bf16.mxu1 %v1240_v17 }
 0x546   : > { %1284 = vmatpush1.bf16.msra.mxu1 %v1239_v62  ;;  %v1830_v62 = vld [vmem:[%s2074_s22 + $0x20] sm:$0xff] }
 0x549   : > { %1524 = vmatmul.mubr.msk.bf16.vlgmr.msra.gmra.mrb[64].mxu1 %vm271_vm0, %v1600_v29  ;;  %v1831_v29 = vld [vmem:[%s2074_s22 + $0x28] sm:$0xff] }
 0x54a   : > { %1323 = vmatprep.mubr.bf16.mxu1 %v2900_v35 }
 0x551   : > { %1525 = vmatmul.mubr.msk.bf16.gmra.mrb[68].mxu1 %vm271_vm0, %v1601_v30 }
 0x61c   : > { %v1315_v59 = vpop.f32.mrb[64].mxu1 }
 0x61d   : > { %v1317_v15 = vpop.f32.mrb[65].mxu1  ;;  %v1316_v1 = vadd.f32 %v1315_v59, %v1248_v3  ;;  %v1833_v59 = vld [vmem:[%s2074_s22 + $0x38] sm:$0xff] }
 0x61e   : > { %v1319_v22 = vpop.f32.mrb[66].mxu1  ;;  %v1318_v9 = vadd.f32 %v1317_v15, %v1248_v3 }
 0x61f   : > { %v1320_v18 = vadd.f32 %v1319_v22, %v1253_v43  ;;  %v1321_v28 = vpop.f32.mrb[67].mxu1  ;;  %v1526_v14 = vmul.f32 -1.442695, %v1316_v1 }
 0x620   : > { %v1322_v39 = vadd.f32 %v1321_v28, %v1253_v43  ;;  %v1527_v5 = vmul.f32 -1.442695, %v1318_v9  ;;  %v1832_v43 = vld [vmem:[%s2074_s22 + $0x30] sm:$0xff] }
 0x621   : > { %v1528_v63 = vmul.f32 -1.442695, %v1320_v18  ;;  %1794 = vpow2.f32 %v1526_v14 }
 0x622   : > { %v1529_v19 = vmul.f32 -1.442695, %v1322_v39  ;;  %1796 = vpow2.f32 %v1527_v5 }
 0x623   : > { %1798 = vpow2.f32 %v1528_v63 }
 0x624   : > { %1800 = vpow2.f32 %v1529_v19  ;;  %v1325_v60 = vpop.f32.mrb[68].mxu1 }
 0x625   : > { %v1326_v41 = vadd.f32 %v1325_v60, %v1258_v34  ;;  %v1327_v61 = vpop.f32.mrb[69].mxu1 }
 0x626   : > { %v1328_v45 = vadd.f32 %v1327_v61, %v1258_v34  ;;  %v1329_v7 = vpop.f32.mrb[70].mxu1 }
 0x627   : > { %v1530_v32 = vmul.f32 -1.442695, %v1326_v41  ;;  %v1330_v46 = vadd.f32 %v1329_v7, %v1263_v38  ;;  %v1331_v23 = vpop.f32.mrb[71].mxu1 }
 0x628   : > { %v1531_v44 = vmul.f32 -1.442695, %v1328_v45  ;;  %v1332_v57 = vadd.f32 %v1331_v23, %v1263_v38 }
 0x629   : > { %1802 = vpow2.f32 %v1530_v32  ;;  %v1532_v40 = vmul.f32 -1.442695, %v1330_v46 }
 0x62a   : > { %1804 = vpow2.f32 %v1531_v44  ;;  %v1533_v36 = vmul.f32 -1.442695, %v1332_v57 }
 0x62b   : > { %v1795_v10 = vpop.eup %1794  ;;  %1806 = vpow2.f32 %v1532_v40 }
 0x62c   : > { %v1797_v31 = vpop.eup %1796  ;;  %v1358_v54 = vadd.f32 1.0, %v1795_v10  ;;  %1808 = vpow2.f32 %v1533_v36 }
 0x62d   : > { %v1799_v8 = vpop.eup %1798  ;;  %v1359_v24 = vadd.f32 1.0, %v1797_v31 }
 0x62e   : > { %v1801_v49 = vpop.eup %1800  ;;  %v1360_v21 = vadd.f32 1.0, %v1799_v8  ;;  %1810 = vrcp.f32 %v1358_v54 }
 0x62f   : > { %v1361_v53 = vadd.f32 1.0, %v1801_v49  ;;  %1812 = vrcp.f32 %v1359_v24 }
 0x630   : > { %1814 = vrcp.f32 %v1360_v21 }
 0x631   : > { %1816 = vrcp.f32 %v1361_v53 }
 0x633   : > { %v1803_v50 = vpop.eup %1802 }
 0x634   : > { %v1805_v37 = vpop.eup %1804  ;;  %v1362_v13 = vadd.f32 1.0, %v1803_v50 }
 0x635   : > { %v1807_v4 = vpop.eup %1806  ;;  %v1363_v27 = vadd.f32 1.0, %v1805_v37 }
 0x636   : > { %v1809_v51 = vpop.eup %1808  ;;  %1818 = vrcp.f32 %v1362_v13  ;;  %v1364_v0 = vadd.f32 1.0, %v1807_v4 }
 0x637   : > { %1820 = vrcp.f32 %v1363_v27  ;;  %v1365_v2 = vadd.f32 1.0, %v1809_v51 }
 0x638   : > { %v1811_v55 = vpop.eup %1810  ;;  %1822 = vrcp.f32 %v1364_v0 }
 0x639   : > { %v1813_v11 = vpop.eup %1812  ;;  %v1382_v48 = vmul.f32 %v1826_v16, %v1811_v55  ;;  %1824 = vrcp.f32 %v1365_v2 }
 0x63a   : > { %v1815_v47 = vpop.eup %1814  ;;  %v1383_v52 = vmul.f32 %v1827_v6, %v1813_v11 }
 0x63b   : > { %v1817_v20 = vpop.eup %1816  ;;  %v1384_v12 = vmul.f32 %v1828_v58, %v1815_v47  ;;  %1390 = vst [vmem:[%s215_s6] sm:$0xff] %v1382_v48 }
 0x63c   : > { %v1385_v25 = vmul.f32 %v1829_v56, %v1817_v20  ;;  %1391 = vst [vmem:[%s215_s6 + $0x8] sm:$0xff] %v1383_v52 }
 0x63d   : > { %1392 = vst [vmem:[%s215_s6 + $0x10] sm:$0xff] %v1384_v12 }
 0x63e   : > { %1393 = vst [vmem:[%s215_s6 + $0x18] sm:$0xff] %v1385_v25 }
 0x640   : > { %v1819_v33 = vpop.eup %1818 }
 0x641   : > { %v1821_v26 = vpop.eup %1820  ;;  %v1386_v42 = vmul.f32 %v1830_v62, %v1819_v33 }
 0x642   : > { %v1823_v17 = vpop.eup %1822  ;;  %v1387_v35 = vmul.f32 %v1831_v29, %v1821_v26 }
 0x643   : > { %v1825_v30 = vpop.eup %1824  ;;  %1394 = vst [vmem:[%s215_s6 + $0x20] sm:$0xff] %v1386_v42  ;;  %v1388_v3 = vmul.f32 %v1832_v43, %v1823_v17 }
 0x644   : > { %1395 = vst [vmem:[%s215_s6 + $0x28] sm:$0xff] %v1387_v35  ;;  %v1389_v15 = vmul.f32 %v1833_v59, %v1825_v30 }
 0x645   : > { %1396 = vst [vmem:[%s215_s6 + $0x30] sm:$0xff] %v1388_v3 }
 0x646   : > { %1397 = vst [vmem:[%s215_s6 + $0x38] sm:$0xff] %v1389_v15 }
 0x647   : > { %1877 = shalt.err (!%p1874_p2)
}
 0x648   : > { %s1878_s22 = scalar_lea.hbm %s2750_s26, 1024  ;;  %s1882_s29 = scalar_lea.hbm %s2801_s4, 2048 }
 0x649   : > { %p1879_p4 = scmp.ne.s32.totalorder %s2750_s26, %s1878_s22  ;;  %p1883_p9 = scmp.lt.u32.totalorder %s2750_s26, %s2801_s4 }
 0x64a   : > { %p1884_p1 = scmp.lt.u32.totalorder %s1882_s29, %s1878_s22  ;;  %p1886_p6 = scmp.lt.u32.totalorder %s1878_s22, %s2750_s26 }
 0x64b   : > { %p1880_p5 = pnand %p1879_p4, %p2901_p11 }
 0x64c   : > { %p1885_p3 = por %p1884_p1, %p1883_p9 }
 0x64d   : > { %p1881_p7 = pneg %p1880_p5 }
 0x64e   : > { %p1887_p12 = por %p1886_p6, %p1885_p3 }
 0x650   : > { %p1888_p13 = pnand %p1887_p12, %p1881_p7 }
 0x652   : > { %1891 = shalt.err (!%p1888_p13)
}
 0x653   : > { %s1937_s6 = smov 256   ;;  %s1938_s7 = smov 16  }
 0x654   : > { %1543 = dma.vmem_to_hbm [thread:$0]  (%p2901_p11), %s2752_s9, 1024, %s2750_s26, %s1399_s19, %s1937_s6, %s1937_s6, %s1938_s7  }
 0x655 PF: > { %s1427_s14 = sand.u32 1, %s1918_s15   ;;  %p2902_p8 = scmp.ne.s32.totalorder %s2835_s28, 0 }
 0x656   : > { %p2903_p10 = scmp.ge.s32.totalorder %s1930_s18, 2  ;;  %s1428_s20 = scalar_lea.sflag [#allocation4], %s1427_s14 }
 0x658   : > { %p1550_p0 = pnand %p2903_p10, %p2902_p8 }
 0x65a   : > { %1913 = dma.done.wait (!%p1550_p0), %s1428_s20, 1024  }
 0x65b   : > { %1915 = vsyncadd (!%p1550_p0), %s1428_s20, 4294966272  ;;  %p17_p2 = scmp.ge.s32.totalorder %s1989_s21, 4   ;;  %s2904_s15 = smov %s1922_s16 }
 0x65c   : > { %s2905_s16 = smov %s1926_s17  ;;  %s2906_s17 = smov %s2001_s24 }
 0x65d   : > { %s2907_s18 = smov %s1989_s21  ;;  %19 = sbr.rel (!%p17_p2) target bundleno = 5 (0x5), region = 81 }
 0x664   :  { %1433 = vsyncpa [#allocation3], 1 }
 0x665   :  { %1435 = vsyncpa [#allocation3 + $0x1], 1 }
 0x666   :  { %1436 = vsyncpa [#allocation4], 1 }
 0x667   :  { %1438 = vsyncpa [#allocation4 + $0x1], 1 }

</bundles_post_ra>
